<compile_context>
chip_gen: v5e
topology: v5e:2x2
jax: 0.10.0
libtpu: 0.0.40
codegen_flags: <defaults>
</compile_context>

<pallas_src>
import functools
import math

import jax
import jax.numpy as jnp
from jax.experimental import pallas as pl
from jax.experimental.pallas import tpu as pltpu


# ----------------------------------------------------------------------------
# Helpers
# ----------------------------------------------------------------------------
def _layer_norm(x, gamma, beta, eps=1e-5):
    mu = jnp.mean(x, axis=-1, keepdims=True)
    var = jnp.mean(jnp.square(x - mu), axis=-1, keepdims=True)
    return (x - mu) * jax.lax.rsqrt(var + eps) * gamma + beta


def _const_spec(arr):
    """Whole-array block, same block for every grid step (weights stay resident)."""
    n = arr.ndim
    return pl.BlockSpec(arr.shape, lambda *g, n=n: (0,) * n)


def _pick_tile(dim, pref):
    if dim % pref == 0:
        return pref
    if dim % 8 == 0 and dim > 8:
        return 8
    return dim


# ----------------------------------------------------------------------------
# Kernels
# ----------------------------------------------------------------------------
def encoder_layer_kernel(*refs, nhead, emb_scale):
    """One post-norm nn.TransformerEncoderLayer (MHA + ReLU FFN) for one batch row.

    If emb_scale is not None this is the first layer and the kernel also applies
    x = x * sqrt(d_model) + positional_encoding (fused embedding/PE stage).
    Block = one batch element: x_ref is (S, D).
    """
    if emb_scale is not None:
        (x_ref, pe_ref, mask_ref,
         wq_ref, bq_ref, wk_ref, bk_ref, wv_ref, bv_ref, wo_ref, bo_ref,
         g1_ref, be1_ref, w1_ref, b1_ref, w2_ref, b2_ref, g2_ref, be2_ref,
         o_ref) = refs
    else:
        (x_ref, mask_ref,
         wq_ref, bq_ref, wk_ref, bk_ref, wv_ref, bv_ref, wo_ref, bo_ref,
         g1_ref, be1_ref, w1_ref, b1_ref, w2_ref, b2_ref, g2_ref, be2_ref,
         o_ref) = refs
        pe_ref = None

    S, D = x_ref.shape
    hd = D // nhead
    f32 = jnp.float32
    bf16 = jnp.bfloat16

    x = x_ref[...].astype(f32)                                   # (S, D)
    if emb_scale is not None:
        x = x * emb_scale + pe_ref[...].astype(f32)              # fused embed scale + PE

    # ---- multi-head self-attention (head-batched, no transposes) ------------
    xb = x.astype(bf16)
    xh = jnp.broadcast_to(xb, (nhead, S, D))                     # (H, S, D)

    def head_proj(w_ref, b_ref):
        # (H, S, D) x (H, D, hd) -> (H, S, hd)   (batched NN matmul on the MXU)
        return (jnp.einsum('hsd,hde->hse', xh, w_ref[...],
                           preferred_element_type=f32)
                + b_ref[...].astype(f32))

    q = head_proj(wq_ref, bq_ref) * (1.0 / math.sqrt(hd))
    k = head_proj(wk_ref, bk_ref)
    v = head_proj(wv_ref, bv_ref)

    s = jnp.einsum('hqe,hke->hqk', q.astype(bf16), k.astype(bf16),
                   preferred_element_type=f32)                   # (H, S, S)
    s = s + mask_ref[...].astype(f32)[None, :, :]

    m = jnp.max(s, axis=-1, keepdims=True)
    p = jnp.exp(s - m)
    p = p * pl.reciprocal(jnp.sum(p, axis=-1, keepdims=True), approx=True)

    ctx = jnp.einsum('hqk,hke->hqe', p.astype(bf16), v.astype(bf16),
                     preferred_element_type=f32)                 # (H, S, hd)

    # output projection with head-major weights, then sum over heads
    attn = jnp.sum(jnp.einsum('hqe,hed->hqd', ctx.astype(bf16), wo_ref[...],
                              preferred_element_type=f32),
                   axis=0) + bo_ref[...].astype(f32)             # (S, D)

    # ---- residual + LayerNorm 1 ----------------------------------------------
    h1 = _layer_norm(x + attn, g1_ref[...].astype(f32), be1_ref[...].astype(f32))

    # ---- feed-forward (ReLU) --------------------------------------------------
    ff = jnp.dot(h1.astype(bf16), w1_ref[...],
                 preferred_element_type=f32) + b1_ref[...].astype(f32)
    ff = jnp.maximum(ff, 0.0)
    ff = jnp.dot(ff.astype(bf16), w2_ref[...],
                 preferred_element_type=f32) + b2_ref[...].astype(f32)

    # ---- residual + LayerNorm 2 ----------------------------------------------
    h2 = _layer_norm(h1 + ff, g2_ref[...].astype(f32), be2_ref[...].astype(f32))
    o_ref[...] = h2.astype(o_ref.dtype)


def decoder_kernel(x_ref, w_ref, b_ref, o_ref):
    o_ref[...] = (jnp.dot(x_ref[...].astype(jnp.bfloat16), w_ref[...],
                          preferred_element_type=jnp.float32)
                  + b_ref[...].astype(jnp.float32)).astype(o_ref.dtype)


# ----------------------------------------------------------------------------
# Parameters (deterministic, synthetic; weights stored bf16 for MXU operands)
# ----------------------------------------------------------------------------
def init_params(key, ntoken, d_model, nhead, d_hid, nlayers, max_len=512):
    hd = d_model // nhead
    keys = jax.random.split(key, 2 + nlayers)
    params = {}
    params["embedding"] = jax.random.normal(keys[0], (ntoken, d_model), jnp.float32)

    # sinusoidal positional-encoding table (max_len, d_model)
    pos = jnp.arange(max_len, dtype=jnp.float32)[:, None]
    div = jnp.exp(jnp.arange(0, d_model, 2, dtype=jnp.float32)
                  * (-math.log(10000.0) / d_model))
    pe = jnp.stack([jnp.sin(pos * div), jnp.cos(pos * div)],
                   axis=-1).reshape(max_len, d_model)
    params["pe"] = pe

    def lin(k, fan_in, shape):
        return (jax.random.normal(k, shape, jnp.float32)
                / math.sqrt(fan_in)).astype(jnp.bfloat16)

    layers = []
    for i in range(nlayers):
        lk = jax.random.split(keys[1 + i], 6)
        layers.append(dict(
            # head-major projection weights: Q/K/V come out already per-head
            wq=lin(lk[0], d_model, (nhead, d_model, hd)),
            bq=jnp.zeros((nhead, 1, hd), jnp.float32),
            wk=lin(lk[1], d_model, (nhead, d_model, hd)),
            bk=jnp.zeros((nhead, 1, hd), jnp.float32),
            wv=lin(lk[2], d_model, (nhead, d_model, hd)),
            bv=jnp.zeros((nhead, 1, hd), jnp.float32),
            wo=lin(lk[3], d_model, (nhead, hd, d_model)),
            bo=jnp.zeros((1, d_model), jnp.float32),
            g1=jnp.ones((1, d_model), jnp.float32),
            b1n=jnp.zeros((1, d_model), jnp.float32),
            w1=lin(lk[4], d_model, (d_model, d_hid)),
            b1=jnp.zeros((1, d_hid), jnp.float32),
            w2=lin(lk[5], d_hid, (d_hid, d_model)),
            b2=jnp.zeros((1, d_model), jnp.float32),
            g2=jnp.ones((1, d_model), jnp.float32),
            b2n=jnp.zeros((1, d_model), jnp.float32),
        ))
    params["layers"] = layers
    params["dec_w"] = lin(keys[1 + nlayers], d_model, (d_model, ntoken))
    params["dec_b"] = jnp.zeros((1, ntoken), jnp.float32)
    return params


# ----------------------------------------------------------------------------
# pallas_call builders
# ----------------------------------------------------------------------------
_WEIGHT_ORDER = ("wq", "bq", "wk", "bk", "wv", "bv", "wo", "bo",
                 "g1", "b1n", "w1", "b1", "w2", "b2", "g2", "b2n")


def _encoder_layer_call(x, pe, mask, layer, *, nhead, first, emb_scale):
    B, S, D = x.shape
    kernel = functools.partial(encoder_layer_kernel, nhead=nhead,
                               emb_scale=(emb_scale if first else None))

    inputs = [x]
    in_specs = [pl.BlockSpec((None, S, D), lambda b: (b, 0, 0))]
    if first:
        inputs.append(pe)
        in_specs.append(pl.BlockSpec((S, D), lambda b: (0, 0)))
    inputs.append(mask)
    in_specs.append(pl.BlockSpec((S, S), lambda b: (0, 0)))
    for name in _WEIGHT_ORDER:
        arr = layer[name]
        inputs.append(arr)
        in_specs.append(_const_spec(arr))

    return pl.pallas_call(
        kernel,
        out_shape=jax.ShapeDtypeStruct((B, S, D), jnp.float32),
        grid=(B,),
        in_specs=in_specs,
        out_specs=pl.BlockSpec((None, S, D), lambda b: (b, 0, 0)),
        compiler_params=pltpu.CompilerParams(dimension_semantics=("parallel",)),
    )(*inputs)


def _decoder_call(x, w, b):
    M, D = x.shape
    ntoken = w.shape[1]
    tm = _pick_tile(M, 128)
    tn = 128 if ntoken % 128 == 0 else ntoken
    return pl.pallas_call(
        decoder_kernel,
        out_shape=jax.ShapeDtypeStruct((M, ntoken), jnp.float32),
        grid=(M // tm, ntoken // tn),
        in_specs=[pl.BlockSpec((tm, D), lambda i, j: (i, 0)),
                  pl.BlockSpec((D, tn), lambda i, j: (0, j)),
                  pl.BlockSpec((1, tn), lambda i, j: (0, j))],
        out_specs=pl.BlockSpec((tm, tn), lambda i, j: (i, j)),
        compiler_params=pltpu.CompilerParams(
            dimension_semantics=("parallel", "parallel")),
    )(x, w, b)


# ----------------------------------------------------------------------------
# Forward wrapper
# ----------------------------------------------------------------------------
def transformer_forward(tokens, mask, params, *, nhead):
    S, B = tokens.shape
    ntoken, D = params["embedding"].shape

    # embedding gather (wrapper glue), batch-major (B, S, D)
    emb = jnp.transpose(params["embedding"][tokens], (1, 0, 2))
    pe = params["pe"][:S]                                        # (S, D)
    # TODO(synk): dropout (pos-encoder and encoder layers) is identity / eval-mode.

    x = emb
    for li, layer in enumerate(params["layers"]):
        x = _encoder_layer_call(x, pe, mask, layer, nhead=nhead,
                                first=(li == 0), emb_scale=math.sqrt(D))

    logits = _decoder_call(x.reshape(B * S, D), params["dec_w"], params["dec_b"])

    # back to PyTorch's (S, B, ntoken)
    return jnp.transpose(logits.reshape(B, S, ntoken), (1, 0, 2))


# ----------------------------------------------------------------------------
if __name__ == "__main__":
    ntoken, d_model, nhead, d_hid, nlayers = 64, 32, 4, 64, 2
    S, B = 8, 2

    key = jax.random.PRNGKey(0)
    kp, kt = jax.random.split(key)
    params = init_params(kp, ntoken, d_model, nhead, d_hid, nlayers)

    tokens = jax.random.randint(kt, (S, B), 0, ntoken, dtype=jnp.int32)
    # causal attention mask (additive float mask; -1e30 stands in for -inf)
    idx = jnp.arange(S)
    mask = jnp.where(idx[None, :] <= idx[:, None], 0.0, -1e30).astype(jnp.float32)

    fwd = jax.jit(functools.partial(transformer_forward, nhead=nhead))
    out = fwd(tokens, mask, params)
    out = jax.block_until_ready(out)
    assert out.shape == (S, B, ntoken), out.shape
    assert bool(jnp.all(jnp.isfinite(out)))
    print("KERNEL_OK")
</pallas_src>

<mosaic_0001>
module attributes {stable_mosaic.version = 11 : i64} {
  func.func @decoder_kernel(%arg0: i32, %arg1: i32, %arg2: memref<8x32xf32, #tpu.memory_space<vmem>>, %arg3: memref<32x64xbf16, #tpu.memory_space<vmem>>, %arg4: memref<1x64xf32, #tpu.memory_space<vmem>>, %arg5: memref<8x64xf32, #tpu.memory_space<vmem>>) attributes {dimension_semantics = [#tpu.dimension_semantics<parallel>, #tpu.dimension_semantics<parallel>], iteration_bounds = array<i64: 2, 1>, scalar_prefetch = 0 : i64, scratch_operands = 0 : i64, tpu.core_type = #tpu.core_type<tc>, window_params = [{transform_indices = @transform_0, window_bounds = array<i64: 8, 32>}, {transform_indices = @transform_1, window_bounds = array<i64: 32, 64>}, {transform_indices = @transform_2, window_bounds = array<i64: 1, 64>}, {transform_indices = @transform_3, window_bounds = array<i64: 8, 64>}]} {
    %c0 = arith.constant 0 : index
    %c0_0 = arith.constant 0 : index
    %0 = vector.load %arg2[%c0, %c0_0] : memref<8x32xf32, #tpu.memory_space<vmem>>, vector<8x32xf32>
    %1 = arith.truncf %0 : vector<8x32xf32> to vector<8x32xbf16>
    %c0_1 = arith.constant 0 : index
    %c0_2 = arith.constant 0 : index
    %2 = vector.load %arg3[%c0_1, %c0_2] : memref<32x64xbf16, #tpu.memory_space<vmem>>, vector<32x64xbf16>
    %cst = arith.constant dense<0.000000e+00> : vector<8x64xf32>
    %3 = tpu.matmul %1, %2, %cst {dimension_numbers = #tpu.dot_dimension_numbers<[1], [0], [0], [1], [0, 0, 1, 1], [], []>} : vector<8x32xbf16>, vector<32x64xbf16>, vector<8x64xf32> -> vector<8x64xf32>
    %c0_3 = arith.constant 0 : index
    %c0_4 = arith.constant 0 : index
    %4 = vector.load %arg4[%c0_3, %c0_4] : memref<1x64xf32, #tpu.memory_space<vmem>>, vector<1x64xf32>
    %5 = vector.broadcast %4 : vector<1x64xf32> to vector<8x64xf32>
    %6 = arith.addf %3, %5 : vector<8x64xf32>
    %c0_5 = arith.constant 0 : index
    %c0_6 = arith.constant 0 : index
    %7 = vector.load %arg5[%c0_5, %c0_6] : memref<8x64xf32, #tpu.memory_space<vmem>>, vector<8x64xf32>
    tpu.vector_store %arg5[%c0_5, %c0_6], %6 {strides = array<i32>} : memref<8x64xf32, #tpu.memory_space<vmem>>, vector<8x64xf32>,
    return
  }
  func.func @transform_0(%arg0: i32, %arg1: i32) -> (i32, i32) {
    %c0_i32 = arith.constant 0 : i32
    %c0_i32_0 = arith.constant 0 : i32
    return %arg0, %c0_i32 : i32, i32
  }
  func.func @transform_1(%arg0: i32, %arg1: i32) -> (i32, i32) {
    %c0_i32 = arith.constant 0 : i32
    %c0_i32_0 = arith.constant 0 : i32
    return %c0_i32, %arg1 : i32, i32
  }
  func.func @transform_2(%arg0: i32, %arg1: i32) -> (i32, i32) {
    %c0_i32 = arith.constant 0 : i32
    %c0_i32_0 = arith.constant 0 : i32
    return %c0_i32, %arg1 : i32, i32
  }
  func.func @transform_3(%arg0: i32, %arg1: i32) -> (i32, i32) {
    %c0_i32 = arith.constant 0 : i32
    return %arg0, %arg1 : i32, i32
  }
}

module attributes {stable_mosaic.version = 11 : i64} {
  func.func @encoder_layer_kernel(%arg0: i32, %arg1: memref<1x8x32xf32, #tpu.memory_space<vmem>>, %arg2: memref<8x32xf32, #tpu.memory_space<vmem>>, %arg3: memref<8x8xf32, #tpu.memory_space<vmem>>, %arg4: memref<4x32x8xbf16, #tpu.memory_space<vmem>>, %arg5: memref<4x1x8xf32, #tpu.memory_space<vmem>>, %arg6: memref<4x32x8xbf16, #tpu.memory_space<vmem>>, %arg7: memref<4x1x8xf32, #tpu.memory_space<vmem>>, %arg8: memref<4x32x8xbf16, #tpu.memory_space<vmem>>, %arg9: memref<4x1x8xf32, #tpu.memory_space<vmem>>, %arg10: memref<4x8x32xbf16, #tpu.memory_space<vmem>>, %arg11: memref<1x32xf32, #tpu.memory_space<vmem>>, %arg12: memref<1x32xf32, #tpu.memory_space<vmem>>, %arg13: memref<1x32xf32, #tpu.memory_space<vmem>>, %arg14: memref<32x64xbf16, #tpu.memory_space<vmem>>, %arg15: memref<1x64xf32, #tpu.memory_space<vmem>>, %arg16: memref<64x32xbf16, #tpu.memory_space<vmem>>, %arg17: memref<1x32xf32, #tpu.memory_space<vmem>>, %arg18: memref<1x32xf32, #tpu.memory_space<vmem>>, %arg19: memref<1x32xf32, #tpu.memory_space<vmem>>, %arg20: memref<1x8x32xf32, #tpu.memory_space<vmem>>) attributes {dimension_semantics = [#tpu.dimension_semantics<parallel>], iteration_bounds = array<i64: 2>, scalar_prefetch = 0 : i64, scratch_operands = 0 : i64, tpu.core_type = #tpu.core_type<tc>, window_params = [{transform_indices = @transform_0, window_bounds = array<i64: 1, 8, 32>}, {pipeline_mode = #tpu.pipeline_mode<synchronous>, transform_indices = @transform_1, window_bounds = array<i64: 8, 32>}, {pipeline_mode = #tpu.pipeline_mode<synchronous>, transform_indices = @transform_2, window_bounds = array<i64: 8, 8>}, {pipeline_mode = #tpu.pipeline_mode<synchronous>, transform_indices = @transform_3, window_bounds = array<i64: 4, 32, 8>}, {pipeline_mode = #tpu.pipeline_mode<synchronous>, transform_indices = @transform_4, window_bounds = array<i64: 4, 1, 8>}, {pipeline_mode = #tpu.pipeline_mode<synchronous>, transform_indices = @transform_5, window_bounds = array<i64: 4, 32, 8>}, {pipeline_mode = #tpu.pipeline_mode<synchronous>, transform_indices = @transform_6, window_bounds = array<i64: 4, 1, 8>}, {pipeline_mode = #tpu.pipeline_mode<synchronous>, transform_indices = @transform_7, window_bounds = array<i64: 4, 32, 8>}, {pipeline_mode = #tpu.pipeline_mode<synchronous>, transform_indices = @transform_8, window_bounds = array<i64: 4, 1, 8>}, {pipeline_mode = #tpu.pipeline_mode<synchronous>, transform_indices = @transform_9, window_bounds = array<i64: 4, 8, 32>}, {pipeline_mode = #tpu.pipeline_mode<synchronous>, transform_indices = @transform_10, window_bounds = array<i64: 1, 32>}, {pipeline_mode = #tpu.pipeline_mode<synchronous>, transform_indices = @transform_11, window_bounds = array<i64: 1, 32>}, {pipeline_mode = #tpu.pipeline_mode<synchronous>, transform_indices = @transform_12, window_bounds = array<i64: 1, 32>}, {pipeline_mode = #tpu.pipeline_mode<synchronous>, transform_indices = @transform_13, window_bounds = array<i64: 32, 64>}, {pipeline_mode = #tpu.pipeline_mode<synchronous>, transform_indices = @transform_14, window_bounds = array<i64: 1, 64>}, {pipeline_mode = #tpu.pipeline_mode<synchronous>, transform_indices = @transform_15, window_bounds = array<i64: 64, 32>}, {pipeline_mode = #tpu.pipeline_mode<synchronous>, transform_indices = @transform_16, window_bounds = array<i64: 1, 32>}, {pipeline_mode = #tpu.pipeline_mode<synchronous>, transform_indices = @transform_17, window_bounds = array<i64: 1, 32>}, {pipeline_mode = #tpu.pipeline_mode<synchronous>, transform_indices = @transform_18, window_bounds = array<i64: 1, 32>}, {transform_indices = @transform_19, window_bounds = array<i64: 1, 8, 32>}]} {
    %c0 = arith.constant 0 : index
    %c0_0 = arith.constant 0 : index
    %c0_1 = arith.constant 0 : index
    %0 = vector.load %arg1[%c0, %c0_0, %c0_1] : memref<1x8x32xf32, #tpu.memory_space<vmem>>, vector<1x8x32xf32>
    %1 = vector.shape_cast %0 : vector<1x8x32xf32> to vector<8x32xf32>
    %cst = arith.constant 5.65685415 : f32
    %2 = vector.broadcast %cst : f32 to vector<8x32xf32>
    %3 = arith.mulf %1, %2 : vector<8x32xf32>
    %c0_2 = arith.constant 0 : index
    %c0_3 = arith.constant 0 : index
    %4 = vector.load %arg2[%c0_2, %c0_3] : memref<8x32xf32, #tpu.memory_space<vmem>>, vector<8x32xf32>
    %5 = arith.addf %3, %4 : vector<8x32xf32>
    %6 = arith.truncf %5 : vector<8x32xf32> to vector<8x32xbf16>
    %7 = vector.shape_cast %6 : vector<8x32xbf16> to vector<1x8x32xbf16>
    %8 = vector.broadcast %7 : vector<1x8x32xbf16> to vector<4x8x32xbf16>
    %c0_4 = arith.constant 0 : index
    %c0_5 = arith.constant 0 : index
    %c0_6 = arith.constant 0 : index
    %9 = vector.load %arg4[%c0_4, %c0_5, %c0_6] : memref<4x32x8xbf16, #tpu.memory_space<vmem>>, vector<4x32x8xbf16>
    "tpu.trace_start"() <{level = 10 : i32, message = "hsd,hde->hse"}> : () -> ()
    %cst_7 = arith.constant dense<0.000000e+00> : vector<4x8x8xf32>
    %10 = tpu.matmul %8, %9, %cst_7 {dimension_numbers = #tpu.dot_dimension_numbers<[2], [1], [1], [2], [0, 0, 0, 1, 1, 2], [0], [0]>} : vector<4x8x32xbf16>, vector<4x32x8xbf16>, vector<4x8x8xf32> -> vector<4x8x8xf32>
    "tpu.trace_stop"() : () -> ()
    %c0_8 = arith.constant 0 : index
    %c0_9 = arith.constant 0 : index
    %c0_10 = arith.constant 0 : index
    %11 = vector.load %arg5[%c0_8, %c0_9, %c0_10] : memref<4x1x8xf32, #tpu.memory_space<vmem>>, vector<4x1x8xf32>
    %12 = vector.broadcast %11 : vector<4x1x8xf32> to vector<4x8x8xf32>
    %13 = arith.addf %10, %12 : vector<4x8x8xf32>
    %cst_11 = arith.constant 0.353553385 : f32
    %14 = vector.broadcast %cst_11 : f32 to vector<4x8x8xf32>
    %15 = arith.mulf %13, %14 : vector<4x8x8xf32>
    %c0_12 = arith.constant 0 : index
    %c0_13 = arith.constant 0 : index
    %c0_14 = arith.constant 0 : index
    %16 = vector.load %arg6[%c0_12, %c0_13, %c0_14] : memref<4x32x8xbf16, #tpu.memory_space<vmem>>, vector<4x32x8xbf16>
    "tpu.trace_start"() <{level = 10 : i32, message = "hsd,hde->hse"}> : () -> ()
    %cst_15 = arith.constant dense<0.000000e+00> : vector<4x8x8xf32>
    %17 = tpu.matmul %8, %16, %cst_15 {dimension_numbers = #tpu.dot_dimension_numbers<[2], [1], [1], [2], [0, 0, 0, 1, 1, 2], [0], [0]>} : vector<4x8x32xbf16>, vector<4x32x8xbf16>, vector<4x8x8xf32> -> vector<4x8x8xf32>
    "tpu.trace_stop"() : () -> ()
    %c0_16 = arith.constant 0 : index
    %c0_17 = arith.constant 0 : index
    %c0_18 = arith.constant 0 : index
    %18 = vector.load %arg7[%c0_16, %c0_17, %c0_18] : memref<4x1x8xf32, #tpu.memory_space<vmem>>, vector<4x1x8xf32>
    %19 = vector.broadcast %18 : vector<4x1x8xf32> to vector<4x8x8xf32>
    %20 = arith.addf %17, %19 : vector<4x8x8xf32>
    %c0_19 = arith.constant 0 : index
    %c0_20 = arith.constant 0 : index
    %c0_21 = arith.constant 0 : index
    %21 = vector.load %arg8[%c0_19, %c0_20, %c0_21] : memref<4x32x8xbf16, #tpu.memory_space<vmem>>, vector<4x32x8xbf16>
    "tpu.trace_start"() <{level = 10 : i32, message = "hsd,hde->hse"}> : () -> ()
    %cst_22 = arith.constant dense<0.000000e+00> : vector<4x8x8xf32>
    %22 = tpu.matmul %8, %21, %cst_22 {dimension_numbers = #tpu.dot_dimension_numbers<[2], [1], [1], [2], [0, 0, 0, 1, 1, 2], [0], [0]>} : vector<4x8x32xbf16>, vector<4x32x8xbf16>, vector<4x8x8xf32> -> vector<4x8x8xf32>
    "tpu.trace_stop"() : () -> ()
    %c0_23 = arith.constant 0 : index
    %c0_24 = arith.constant 0 : index
    %c0_25 = arith.constant 0 : index
    %23 = vector.load %arg9[%c0_23, %c0_24, %c0_25] : memref<4x1x8xf32, #tpu.memory_space<vmem>>, vector<4x1x8xf32>
    %24 = vector.broadcast %23 : vector<4x1x8xf32> to vector<4x8x8xf32>
    %25 = arith.addf %22, %24 : vector<4x8x8xf32>
    %26 = arith.truncf %15 : vector<4x8x8xf32> to vector<4x8x8xbf16>
    %27 = arith.truncf %20 : vector<4x8x8xf32> to vector<4x8x8xbf16>
    "tpu.trace_start"() <{level = 10 : i32, message = "hqe,hke->hqk"}> : () -> ()
    %cst_26 = arith.constant dense<0.000000e+00> : vector<4x8x8xf32>
    %28 = tpu.matmul %26, %27, %cst_26 {dimension_numbers = #tpu.dot_dimension_numbers<[2], [2], [1], [1], [0, 0, 0, 1, 1, 1], [0], [0]>} : vector<4x8x8xbf16>, vector<4x8x8xbf16>, vector<4x8x8xf32> -> vector<4x8x8xf32>
    "tpu.trace_stop"() : () -> ()
    %c0_27 = arith.constant 0 : index
    %c0_28 = arith.constant 0 : index
    %29 = vector.load %arg3[%c0_27, %c0_28] : memref<8x8xf32, #tpu.memory_space<vmem>>, vector<8x8xf32>
    %30 = vector.shape_cast %29 : vector<8x8xf32> to vector<1x8x8xf32>
    %31 = vector.broadcast %30 : vector<1x8x8xf32> to vector<4x8x8xf32>
    %32 = arith.addf %28, %31 : vector<4x8x8xf32>
    %cst_29 = arith.constant dense<0xFF800000> : vector<4x8xf32>
    %33 = vector.multi_reduction <maximumf>, %32, %cst_29 [2] : vector<4x8x8xf32> to vector<4x8xf32>
    %34 = vector.shape_cast %33 : vector<4x8xf32> to vector<4x8x1xf32>
    %35 = vector.broadcast %34 : vector<4x8x1xf32> to vector<4x8x8xf32>
    %36 = arith.subf %32, %35 : vector<4x8x8xf32>
    %37 = math.exp %36 : vector<4x8x8xf32>
    %cst_30 = arith.constant dense<0.000000e+00> : vector<4x8xf32>
    %38 = vector.multi_reduction <add>, %37, %cst_30 [2] : vector<4x8x8xf32> to vector<4x8xf32>
    %39 = vector.shape_cast %38 : vector<4x8xf32> to vector<4x8x1xf32>
    %40 = tpu.reciprocal %39 {approx = true} : vector<4x8x1xf32> -> vector<4x8x1xf32>
    %41 = vector.broadcast %40 : vector<4x8x1xf32> to vector<4x8x8xf32>
    %42 = arith.mulf %37, %41 : vector<4x8x8xf32>
    %43 = arith.truncf %42 : vector<4x8x8xf32> to vector<4x8x8xbf16>
    %44 = arith.truncf %25 : vector<4x8x8xf32> to vector<4x8x8xbf16>
    "tpu.trace_start"() <{level = 10 : i32, message = "hqk,hke->hqe"}> : () -> ()
    %cst_31 = arith.constant dense<0.000000e+00> : vector<4x8x8xf32>
    %45 = tpu.matmul %43, %44, %cst_31 {dimension_numbers = #tpu.dot_dimension_numbers<[2], [1], [1], [2], [0, 0, 0, 1, 1, 2], [0], [0]>} : vector<4x8x8xbf16>, vector<4x8x8xbf16>, vector<4x8x8xf32> -> vector<4x8x8xf32>
    "tpu.trace_stop"() : () -> ()
    %46 = arith.truncf %45 : vector<4x8x8xf32> to vector<4x8x8xbf16>
    %c0_32 = arith.constant 0 : index
    %c0_33 = arith.constant 0 : index
    %c0_34 = arith.constant 0 : index
    %47 = vector.load %arg10[%c0_32, %c0_33, %c0_34] : memref<4x8x32xbf16, #tpu.memory_space<vmem>>, vector<4x8x32xbf16>
    "tpu.trace_start"() <{level = 10 : i32, message = "hqe,hed->hqd"}> : () -> ()
    %cst_35 = arith.constant dense<0.000000e+00> : vector<4x8x32xf32>
    %48 = tpu.matmul %46, %47, %cst_35 {dimension_numbers = #tpu.dot_dimension_numbers<[2], [1], [1], [2], [0, 0, 0, 1, 1, 2], [0], [0]>} : vector<4x8x8xbf16>, vector<4x8x32xbf16>, vector<4x8x32xf32> -> vector<4x8x32xf32>
    "tpu.trace_stop"() : () -> ()
    %cst_36 = arith.constant dense<0.000000e+00> : vector<8x32xf32>
    %49 = vector.multi_reduction <add>, %48, %cst_36 [0] : vector<4x8x32xf32> to vector<8x32xf32>
    %c0_37 = arith.constant 0 : index
    %c0_38 = arith.constant 0 : index
    %50 = vector.load %arg11[%c0_37, %c0_38] : memref<1x32xf32, #tpu.memory_space<vmem>>, vector<1x32xf32>
    %51 = vector.broadcast %50 : vector<1x32xf32> to vector<8x32xf32>
    %52 = arith.addf %49, %51 : vector<8x32xf32>
    %53 = arith.addf %5, %52 : vector<8x32xf32>
    %c0_39 = arith.constant 0 : index
    %c0_40 = arith.constant 0 : index
    %54 = vector.load %arg12[%c0_39, %c0_40] : memref<1x32xf32, #tpu.memory_space<vmem>>, vector<1x32xf32>
    %c0_41 = arith.constant 0 : index
    %c0_42 = arith.constant 0 : index
    %55 = vector.load %arg13[%c0_41, %c0_42] : memref<1x32xf32, #tpu.memory_space<vmem>>, vector<1x32xf32>
    %cst_43 = arith.constant dense<0.000000e+00> : vector<8xf32>
    %56 = vector.multi_reduction <add>, %53, %cst_43 [1] : vector<8x32xf32> to vector<8xf32>
    %57 = vector.shape_cast %56 : vector<8xf32> to vector<8x1xf32>
    %cst_44 = arith.constant 3.200000e+01 : f32
    %58 = vector.broadcast %cst_44 : f32 to vector<8x1xf32>
    %59 = arith.divf %57, %58 : vector<8x1xf32>
    %60 = vector.broadcast %59 : vector<8x1xf32> to vector<8x32xf32>
    %61 = arith.subf %53, %60 : vector<8x32xf32>
    %62 = arith.mulf %61, %61 : vector<8x32xf32>
    %cst_45 = arith.constant dense<0.000000e+00> : vector<8xf32>
    %63 = vector.multi_reduction <add>, %62, %cst_45 [1] : vector<8x32xf32> to vector<8xf32>
    %64 = vector.shape_cast %63 : vector<8xf32> to vector<8x1xf32>
    %cst_46 = arith.constant 3.200000e+01 : f32
    %65 = vector.broadcast %cst_46 : f32 to vector<8x1xf32>
    %66 = arith.divf %64, %65 : vector<8x1xf32>
    %67 = vector.broadcast %59 : vector<8x1xf32> to vector<8x32xf32>
    %68 = arith.subf %53, %67 : vector<8x32xf32>
    %cst_47 = arith.constant 9.99999974E-6 : f32
    %69 = vector.broadcast %cst_47 : f32 to vector<8x1xf32>
    %70 = arith.addf %66, %69 : vector<8x1xf32>
    %71 = math.rsqrt %70 : vector<8x1xf32>
    %72 = vector.broadcast %71 : vector<8x1xf32> to vector<8x32xf32>
    %73 = arith.mulf %68, %72 : vector<8x32xf32>
    %74 = vector.broadcast %54 : vector<1x32xf32> to vector<8x32xf32>
    %75 = arith.mulf %73, %74 : vector<8x32xf32>
    %76 = vector.broadcast %55 : vector<1x32xf32> to vector<8x32xf32>
    %77 = arith.addf %75, %76 : vector<8x32xf32>
    %78 = arith.truncf %77 : vector<8x32xf32> to vector<8x32xbf16>
    %c0_48 = arith.constant 0 : index
    %c0_49 = arith.constant 0 : index
    %79 = vector.load %arg14[%c0_48, %c0_49] : memref<32x64xbf16, #tpu.memory_space<vmem>>, vector<32x64xbf16>
    %cst_50 = arith.constant dense<0.000000e+00> : vector<8x64xf32>
    %80 = tpu.matmul %78, %79, %cst_50 {dimension_numbers = #tpu.dot_dimension_numbers<[1], [0], [0], [1], [0, 0, 1, 1], [], []>} : vector<8x32xbf16>, vector<32x64xbf16>, vector<8x64xf32> -> vector<8x64xf32>
    %c0_51 = arith.constant 0 : index
    %c0_52 = arith.constant 0 : index
    %81 = vector.load %arg15[%c0_51, %c0_52] : memref<1x64xf32, #tpu.memory_space<vmem>>, vector<1x64xf32>
    %82 = vector.broadcast %81 : vector<1x64xf32> to vector<8x64xf32>
    %83 = arith.addf %80, %82 : vector<8x64xf32>
    %cst_53 = arith.constant 0.000000e+00 : f32
    %84 = vector.broadcast %cst_53 : f32 to vector<8x64xf32>
    %85 = arith.maximumf %83, %84 : vector<8x64xf32>
    %86 = arith.truncf %85 : vector<8x64xf32> to vector<8x64xbf16>
    %c0_54 = arith.constant 0 : index
    %c0_55 = arith.constant 0 : index
    %87 = vector.load %arg16[%c0_54, %c0_55] : memref<64x32xbf16, #tpu.memory_space<vmem>>, vector<64x32xbf16>
    %cst_56 = arith.constant dense<0.000000e+00> : vector<8x32xf32>
    %88 = tpu.matmul %86, %87, %cst_56 {dimension_numbers = #tpu.dot_dimension_numbers<[1], [0], [0], [1], [0, 0, 1, 1], [], []>} : vector<8x64xbf16>, vector<64x32xbf16>, vector<8x32xf32> -> vector<8x32xf32>
    %c0_57 = arith.constant 0 : index
    %c0_58 = arith.constant 0 : index
    %89 = vector.load %arg17[%c0_57, %c0_58] : memref<1x32xf32, #tpu.memory_space<vmem>>, vector<1x32xf32>
    %90 = vector.broadcast %89 : vector<1x32xf32> to vector<8x32xf32>
    %91 = arith.addf %88, %90 : vector<8x32xf32>
    %92 = arith.addf %77, %91 : vector<8x32xf32>
    %c0_59 = arith.constant 0 : index
    %c0_60 = arith.constant 0 : index
    %93 = vector.load %arg18[%c0_59, %c0_60] : memref<1x32xf32, #tpu.memory_space<vmem>>, vector<1x32xf32>
    %c0_61 = arith.constant 0 : index
    %c0_62 = arith.constant 0 : index
    %94 = vector.load %arg19[%c0_61, %c0_62] : memref<1x32xf32, #tpu.memory_space<vmem>>, vector<1x32xf32>
    %cst_63 = arith.constant dense<0.000000e+00> : vector<8xf32>
    %95 = vector.multi_reduction <add>, %92, %cst_63 [1] : vector<8x32xf32> to vector<8xf32>
    %96 = vector.shape_cast %95 : vector<8xf32> to vector<8x1xf32>
    %cst_64 = arith.constant 3.200000e+01 : f32
    %97 = vector.broadcast %cst_64 : f32 to vector<8x1xf32>
    %98 = arith.divf %96, %97 : vector<8x1xf32>
    %99 = vector.broadcast %98 : vector<8x1xf32> to vector<8x32xf32>
    %100 = arith.subf %92, %99 : vector<8x32xf32>
    %101 = arith.mulf %100, %100 : vector<8x32xf32>
    %cst_65 = arith.constant dense<0.000000e+00> : vector<8xf32>
    %102 = vector.multi_reduction <add>, %101, %cst_65 [1] : vector<8x32xf32> to vector<8xf32>
    %103 = vector.shape_cast %102 : vector<8xf32> to vector<8x1xf32>
    %cst_66 = arith.constant 3.200000e+01 : f32
    %104 = vector.broadcast %cst_66 : f32 to vector<8x1xf32>
    %105 = arith.divf %103, %104 : vector<8x1xf32>
    %106 = vector.broadcast %98 : vector<8x1xf32> to vector<8x32xf32>
    %107 = arith.subf %92, %106 : vector<8x32xf32>
    %cst_67 = arith.constant 9.99999974E-6 : f32
    %108 = vector.broadcast %cst_67 : f32 to vector<8x1xf32>
    %109 = arith.addf %105, %108 : vector<8x1xf32>
    %110 = math.rsqrt %109 : vector<8x1xf32>
    %111 = vector.broadcast %110 : vector<8x1xf32> to vector<8x32xf32>
    %112 = arith.mulf %107, %111 : vector<8x32xf32>
    %113 = vector.broadcast %93 : vector<1x32xf32> to vector<8x32xf32>
    %114 = arith.mulf %112, %113 : vector<8x32xf32>
    %115 = vector.broadcast %94 : vector<1x32xf32> to vector<8x32xf32>
    %116 = arith.addf %114, %115 : vector<8x32xf32>
    %c0_68 = arith.constant 0 : index
    %c0_69 = arith.constant 0 : index
    %c0_70 = arith.constant 0 : index
    %117 = vector.load %arg20[%c0_68, %c0_69, %c0_70] : memref<1x8x32xf32, #tpu.memory_space<vmem>>, vector<1x8x32xf32>
    %118 = vector.shape_cast %117 : vector<1x8x32xf32> to vector<8x32xf32>
    %119 = vector.shape_cast %116 : vector<8x32xf32> to vector<1x8x32xf32>
    tpu.vector_store %arg20[%c0_68, %c0_69, %c0_70], %119 {strides = array<i32>} : memref<1x8x32xf32, #tpu.memory_space<vmem>>, vector<1x8x32xf32>,
    return
  }
  func.func @transform_0(%arg0: i32) -> (i32, i32, i32) {
    %c0_i32 = arith.constant 0 : i32
    %c0_i32_0 = arith.constant 0 : i32
    %c0_i32_1 = arith.constant 0 : i32
    return %arg0, %c0_i32, %c0_i32_0 : i32, i32, i32
  }
  func.func @transform_1(%arg0: i32) -> (i32, i32) {
    %c0_i32 = arith.constant 0 : i32
    %c0_i32_0 = arith.constant 0 : i32
    %c0_i32_1 = arith.constant 0 : i32
    return %c0_i32, %c0_i32_0 : i32, i32
  }
  func.func @transform_2(%arg0: i32) -> (i32, i32) {
    %c0_i32 = arith.constant 0 : i32
    %c0_i32_0 = arith.constant 0 : i32
    %c0_i32_1 = arith.constant 0 : i32
    return %c0_i32, %c0_i32_0 : i32, i32
  }
  func.func @transform_3(%arg0: i32) -> (i32, i32, i32) {
    %c0_i32 = arith.constant 0 : i32
    %c0_i32_0 = arith.constant 0 : i32
    %c0_i32_1 = arith.constant 0 : i32
    %c0_i32_2 = arith.constant 0 : i32
    return %c0_i32, %c0_i32_0, %c0_i32_1 : i32, i32, i32
  }
  func.func @transform_4(%arg0: i32) -> (i32, i32, i32) {
    %c0_i32 = arith.constant 0 : i32
    %c0_i32_0 = arith.constant 0 : i32
    %c0_i32_1 = arith.constant 0 : i32
    %c0_i32_2 = arith.constant 0 : i32
    return %c0_i32, %c0_i32_0, %c0_i32_1 : i32, i32, i32
  }
  func.func @transform_5(%arg0: i32) -> (i32, i32, i32) {
    %c0_i32 = arith.constant 0 : i32
    %c0_i32_0 = arith.constant 0 : i32
    %c0_i32_1 = arith.constant 0 : i32
    %c0_i32_2 = arith.constant 0 : i32
    return %c0_i32, %c0_i32_0, %c0_i32_1 : i32, i32, i32
  }
  func.func @transform_6(%arg0: i32) -> (i32, i32, i32) {
    %c0_i32 = arith.constant 0 : i32
    %c0_i32_0 = arith.constant 0 : i32
    %c0_i32_1 = arith.constant 0 : i32
    %c0_i32_2 = arith.constant 0 : i32
    return %c0_i32, %c0_i32_0, %c0_i32_1 : i32, i32, i32
  }
  func.func @transform_7(%arg0: i32) -> (i32, i32, i32) {
    %c0_i32 = arith.constant 0 : i32
    %c0_i32_0 = arith.constant 0 : i32
    %c0_i32_1 = arith.constant 0 : i32
    %c0_i32_2 = arith.constant 0 : i32
    return %c0_i32, %c0_i32_0, %c0_i32_1 : i32, i32, i32
  }
  func.func @transform_8(%arg0: i32) -> (i32, i32, i32) {
    %c0_i32 = arith.constant 0 : i32
    %c0_i32_0 = arith.constant 0 : i32
    %c0_i32_1 = arith.constant 0 : i32
    %c0_i32_2 = arith.constant 0 : i32
    return %c0_i32, %c0_i32_0, %c0_i32_1 : i32, i32, i32
  }
  func.func @transform_9(%arg0: i32) -> (i32, i32, i32) {
    %c0_i32 = arith.constant 0 : i32
    %c0_i32_0 = arith.constant 0 : i32
    %c0_i32_1 = arith.constant 0 : i32
    %c0_i32_2 = arith.constant 0 : i32
    return %c0_i32, %c0_i32_0, %c0_i32_1 : i32, i32, i32
  }
  func.func @transform_10(%arg0: i32) -> (i32, i32) {
    %c0_i32 = arith.constant 0 : i32
    %c0_i32_0 = arith.constant 0 : i32
    %c0_i32_1 = arith.constant 0 : i32
    return %c0_i32, %c0_i32_0 : i32, i32
  }
  func.func @transform_11(%arg0: i32) -> (i32, i32) {
    %c0_i32 = arith.constant 0 : i32
    %c0_i32_0 = arith.constant 0 : i32
    %c0_i32_1 = arith.constant 0 : i32
    return %c0_i32, %c0_i32_0 : i32, i32
  }
  func.func @transform_12(%arg0: i32) -> (i32, i32) {
    %c0_i32 = arith.constant 0 : i32
    %c0_i32_0 = arith.constant 0 : i32
    %c0_i32_1 = arith.constant 0 : i32
    return %c0_i32, %c0_i32_0 : i32, i32
  }
  func.func @transform_13(%arg0: i32) -> (i32, i32) {
    %c0_i32 = arith.constant 0 : i32
    %c0_i32_0 = arith.constant 0 : i32
    %c0_i32_1 = arith.constant 0 : i32
    return %c0_i32, %c0_i32_0 : i32, i32
  }
  func.func @transform_14(%arg0: i32) -> (i32, i32) {
    %c0_i32 = arith.constant 0 : i32
    %c0_i32_0 = arith.constant 0 : i32
    %c0_i32_1 = arith.constant 0 : i32
    return %c0_i32, %c0_i32_0 : i32, i32
  }
  func.func @transform_15(%arg0: i32) -> (i32, i32) {
    %c0_i32 = arith.constant 0 : i32
    %c0_i32_0 = arith.constant 0 : i32
    %c0_i32_1 = arith.constant 0 : i32
    return %c0_i32, %c0_i32_0 : i32, i32
  }
  func.func @transform_16(%arg0: i32) -> (i32, i32) {
    %c0_i32 = arith.constant 0 : i32
    %c0_i32_0 = arith.constant 0 : i32
    %c0_i32_1 = arith.constant 0 : i32
    return %c0_i32, %c0_i32_0 : i32, i32
  }
  func.func @transform_17(%arg0: i32) -> (i32, i32) {
    %c0_i32 = arith.constant 0 : i32
    %c0_i32_0 = arith.constant 0 : i32
    %c0_i32_1 = arith.constant 0 : i32
    return %c0_i32, %c0_i32_0 : i32, i32
  }
  func.func @transform_18(%arg0: i32) -> (i32, i32) {
    %c0_i32 = arith.constant 0 : i32
    %c0_i32_0 = arith.constant 0 : i32
    %c0_i32_1 = arith.constant 0 : i32
    return %c0_i32, %c0_i32_0 : i32, i32
  }
  func.func @transform_19(%arg0: i32) -> (i32, i32, i32) {
    %c0_i32 = arith.constant 0 : i32
    %c0_i32_0 = arith.constant 0 : i32
    %c0_i32_1 = arith.constant 0 : i32
    return %arg0, %c0_i32, %c0_i32_0 : i32, i32, i32
  }
}

module attributes {stable_mosaic.version = 11 : i64} {
  func.func @encoder_layer_kernel(%arg0: i32, %arg1: memref<1x8x32xf32, #tpu.memory_space<vmem>>, %arg2: memref<8x8xf32, #tpu.memory_space<vmem>>, %arg3: memref<4x32x8xbf16, #tpu.memory_space<vmem>>, %arg4: memref<4x1x8xf32, #tpu.memory_space<vmem>>, %arg5: memref<4x32x8xbf16, #tpu.memory_space<vmem>>, %arg6: memref<4x1x8xf32, #tpu.memory_space<vmem>>, %arg7: memref<4x32x8xbf16, #tpu.memory_space<vmem>>, %arg8: memref<4x1x8xf32, #tpu.memory_space<vmem>>, %arg9: memref<4x8x32xbf16, #tpu.memory_space<vmem>>, %arg10: memref<1x32xf32, #tpu.memory_space<vmem>>, %arg11: memref<1x32xf32, #tpu.memory_space<vmem>>, %arg12: memref<1x32xf32, #tpu.memory_space<vmem>>, %arg13: memref<32x64xbf16, #tpu.memory_space<vmem>>, %arg14: memref<1x64xf32, #tpu.memory_space<vmem>>, %arg15: memref<64x32xbf16, #tpu.memory_space<vmem>>, %arg16: memref<1x32xf32, #tpu.memory_space<vmem>>, %arg17: memref<1x32xf32, #tpu.memory_space<vmem>>, %arg18: memref<1x32xf32, #tpu.memory_space<vmem>>, %arg19: memref<1x8x32xf32, #tpu.memory_space<vmem>>) attributes {dimension_semantics = [#tpu.dimension_semantics<parallel>], iteration_bounds = array<i64: 2>, scalar_prefetch = 0 : i64, scratch_operands = 0 : i64, tpu.core_type = #tpu.core_type<tc>, window_params = [{transform_indices = @transform_0, window_bounds = array<i64: 1, 8, 32>}, {pipeline_mode = #tpu.pipeline_mode<synchronous>, transform_indices = @transform_1, window_bounds = array<i64: 8, 8>}, {pipeline_mode = #tpu.pipeline_mode<synchronous>, transform_indices = @transform_2, window_bounds = array<i64: 4, 32, 8>}, {pipeline_mode = #tpu.pipeline_mode<synchronous>, transform_indices = @transform_3, window_bounds = array<i64: 4, 1, 8>}, {pipeline_mode = #tpu.pipeline_mode<synchronous>, transform_indices = @transform_4, window_bounds = array<i64: 4, 32, 8>}, {pipeline_mode = #tpu.pipeline_mode<synchronous>, transform_indices = @transform_5, window_bounds = array<i64: 4, 1, 8>}, {pipeline_mode = #tpu.pipeline_mode<synchronous>, transform_indices = @transform_6, window_bounds = array<i64: 4, 32, 8>}, {pipeline_mode = #tpu.pipeline_mode<synchronous>, transform_indices = @transform_7, window_bounds = array<i64: 4, 1, 8>}, {pipeline_mode = #tpu.pipeline_mode<synchronous>, transform_indices = @transform_8, window_bounds = array<i64: 4, 8, 32>}, {pipeline_mode = #tpu.pipeline_mode<synchronous>, transform_indices = @transform_9, window_bounds = array<i64: 1, 32>}, {pipeline_mode = #tpu.pipeline_mode<synchronous>, transform_indices = @transform_10, window_bounds = array<i64: 1, 32>}, {pipeline_mode = #tpu.pipeline_mode<synchronous>, transform_indices = @transform_11, window_bounds = array<i64: 1, 32>}, {pipeline_mode = #tpu.pipeline_mode<synchronous>, transform_indices = @transform_12, window_bounds = array<i64: 32, 64>}, {pipeline_mode = #tpu.pipeline_mode<synchronous>, transform_indices = @transform_13, window_bounds = array<i64: 1, 64>}, {pipeline_mode = #tpu.pipeline_mode<synchronous>, transform_indices = @transform_14, window_bounds = array<i64: 64, 32>}, {pipeline_mode = #tpu.pipeline_mode<synchronous>, transform_indices = @transform_15, window_bounds = array<i64: 1, 32>}, {pipeline_mode = #tpu.pipeline_mode<synchronous>, transform_indices = @transform_16, window_bounds = array<i64: 1, 32>}, {pipeline_mode = #tpu.pipeline_mode<synchronous>, transform_indices = @transform_17, window_bounds = array<i64: 1, 32>}, {transform_indices = @transform_18, window_bounds = array<i64: 1, 8, 32>}]} {
    %c0 = arith.constant 0 : index
    %c0_0 = arith.constant 0 : index
    %c0_1 = arith.constant 0 : index
    %0 = vector.load %arg1[%c0, %c0_0, %c0_1] : memref<1x8x32xf32, #tpu.memory_space<vmem>>, vector<1x8x32xf32>
    %1 = vector.shape_cast %0 : vector<1x8x32xf32> to vector<8x32xf32>
    %2 = arith.truncf %1 : vector<8x32xf32> to vector<8x32xbf16>
    %3 = vector.shape_cast %2 : vector<8x32xbf16> to vector<1x8x32xbf16>
    %4 = vector.broadcast %3 : vector<1x8x32xbf16> to vector<4x8x32xbf16>
    %c0_2 = arith.constant 0 : index
    %c0_3 = arith.constant 0 : index
    %c0_4 = arith.constant 0 : index
    %5 = vector.load %arg3[%c0_2, %c0_3, %c0_4] : memref<4x32x8xbf16, #tpu.memory_space<vmem>>, vector<4x32x8xbf16>
    "tpu.trace_start"() <{level = 10 : i32, message = "hsd,hde->hse"}> : () -> ()
    %cst = arith.constant dense<0.000000e+00> : vector<4x8x8xf32>
    %6 = tpu.matmul %4, %5, %cst {dimension_numbers = #tpu.dot_dimension_numbers<[2], [1], [1], [2], [0, 0, 0, 1, 1, 2], [0], [0]>} : vector<4x8x32xbf16>, vector<4x32x8xbf16>, vector<4x8x8xf32> -> vector<4x8x8xf32>
    "tpu.trace_stop"() : () -> ()
    %c0_5 = arith.constant 0 : index
    %c0_6 = arith.constant 0 : index
    %c0_7 = arith.constant 0 : index
    %7 = vector.load %arg4[%c0_5, %c0_6, %c0_7] : memref<4x1x8xf32, #tpu.memory_space<vmem>>, vector<4x1x8xf32>
    %8 = vector.broadcast %7 : vector<4x1x8xf32> to vector<4x8x8xf32>
    %9 = arith.addf %6, %8 : vector<4x8x8xf32>
    %cst_8 = arith.constant 0.353553385 : f32
    %10 = vector.broadcast %cst_8 : f32 to vector<4x8x8xf32>
    %11 = arith.mulf %9, %10 : vector<4x8x8xf32>
    %c0_9 = arith.constant 0 : index
    %c0_10 = arith.constant 0 : index
    %c0_11 = arith.constant 0 : index
    %12 = vector.load %arg5[%c0_9, %c0_10, %c0_11] : memref<4x32x8xbf16, #tpu.memory_space<vmem>>, vector<4x32x8xbf16>
    "tpu.trace_start"() <{level = 10 : i32, message = "hsd,hde->hse"}> : () -> ()
    %cst_12 = arith.constant dense<0.000000e+00> : vector<4x8x8xf32>
    %13 = tpu.matmul %4, %12, %cst_12 {dimension_numbers = #tpu.dot_dimension_numbers<[2], [1], [1], [2], [0, 0, 0, 1, 1, 2], [0], [0]>} : vector<4x8x32xbf16>, vector<4x32x8xbf16>, vector<4x8x8xf32> -> vector<4x8x8xf32>
    "tpu.trace_stop"() : () -> ()
    %c0_13 = arith.constant 0 : index
    %c0_14 = arith.constant 0 : index
    %c0_15 = arith.constant 0 : index
    %14 = vector.load %arg6[%c0_13, %c0_14, %c0_15] : memref<4x1x8xf32, #tpu.memory_space<vmem>>, vector<4x1x8xf32>
    %15 = vector.broadcast %14 : vector<4x1x8xf32> to vector<4x8x8xf32>
    %16 = arith.addf %13, %15 : vector<4x8x8xf32>
    %c0_16 = arith.constant 0 : index
    %c0_17 = arith.constant 0 : index
    %c0_18 = arith.constant 0 : index
    %17 = vector.load %arg7[%c0_16, %c0_17, %c0_18] : memref<4x32x8xbf16, #tpu.memory_space<vmem>>, vector<4x32x8xbf16>
    "tpu.trace_start"() <{level = 10 : i32, message = "hsd,hde->hse"}> : () -> ()
    %cst_19 = arith.constant dense<0.000000e+00> : vector<4x8x8xf32>
    %18 = tpu.matmul %4, %17, %cst_19 {dimension_numbers = #tpu.dot_dimension_numbers<[2], [1], [1], [2], [0, 0, 0, 1, 1, 2], [0], [0]>} : vector<4x8x32xbf16>, vector<4x32x8xbf16>, vector<4x8x8xf32> -> vector<4x8x8xf32>
    "tpu.trace_stop"() : () -> ()
    %c0_20 = arith.constant 0 : index
    %c0_21 = arith.constant 0 : index
    %c0_22 = arith.constant 0 : index
    %19 = vector.load %arg8[%c0_20, %c0_21, %c0_22] : memref<4x1x8xf32, #tpu.memory_space<vmem>>, vector<4x1x8xf32>
    %20 = vector.broadcast %19 : vector<4x1x8xf32> to vector<4x8x8xf32>
    %21 = arith.addf %18, %20 : vector<4x8x8xf32>
    %22 = arith.truncf %11 : vector<4x8x8xf32> to vector<4x8x8xbf16>
    %23 = arith.truncf %16 : vector<4x8x8xf32> to vector<4x8x8xbf16>
    "tpu.trace_start"() <{level = 10 : i32, message = "hqe,hke->hqk"}> : () -> ()
    %cst_23 = arith.constant dense<0.000000e+00> : vector<4x8x8xf32>
    %24 = tpu.matmul %22, %23, %cst_23 {dimension_numbers = #tpu.dot_dimension_numbers<[2], [2], [1], [1], [0, 0, 0, 1, 1, 1], [0], [0]>} : vector<4x8x8xbf16>, vector<4x8x8xbf16>, vector<4x8x8xf32> -> vector<4x8x8xf32>
    "tpu.trace_stop"() : () -> ()
    %c0_24 = arith.constant 0 : index
    %c0_25 = arith.constant 0 : index
    %25 = vector.load %arg2[%c0_24, %c0_25] : memref<8x8xf32, #tpu.memory_space<vmem>>, vector<8x8xf32>
    %26 = vector.shape_cast %25 : vector<8x8xf32> to vector<1x8x8xf32>
    %27 = vector.broadcast %26 : vector<1x8x8xf32> to vector<4x8x8xf32>
    %28 = arith.addf %24, %27 : vector<4x8x8xf32>
    %cst_26 = arith.constant dense<0xFF800000> : vector<4x8xf32>
    %29 = vector.multi_reduction <maximumf>, %28, %cst_26 [2] : vector<4x8x8xf32> to vector<4x8xf32>
    %30 = vector.shape_cast %29 : vector<4x8xf32> to vector<4x8x1xf32>
    %31 = vector.broadcast %30 : vector<4x8x1xf32> to vector<4x8x8xf32>
    %32 = arith.subf %28, %31 : vector<4x8x8xf32>
    %33 = math.exp %32 : vector<4x8x8xf32>
    %cst_27 = arith.constant dense<0.000000e+00> : vector<4x8xf32>
    %34 = vector.multi_reduction <add>, %33, %cst_27 [2] : vector<4x8x8xf32> to vector<4x8xf32>
    %35 = vector.shape_cast %34 : vector<4x8xf32> to vector<4x8x1xf32>
    %36 = tpu.reciprocal %35 {approx = true} : vector<4x8x1xf32> -> vector<4x8x1xf32>
    %37 = vector.broadcast %36 : vector<4x8x1xf32> to vector<4x8x8xf32>
    %38 = arith.mulf %33, %37 : vector<4x8x8xf32>
    %39 = arith.truncf %38 : vector<4x8x8xf32> to vector<4x8x8xbf16>
    %40 = arith.truncf %21 : vector<4x8x8xf32> to vector<4x8x8xbf16>
    "tpu.trace_start"() <{level = 10 : i32, message = "hqk,hke->hqe"}> : () -> ()
    %cst_28 = arith.constant dense<0.000000e+00> : vector<4x8x8xf32>
    %41 = tpu.matmul %39, %40, %cst_28 {dimension_numbers = #tpu.dot_dimension_numbers<[2], [1], [1], [2], [0, 0, 0, 1, 1, 2], [0], [0]>} : vector<4x8x8xbf16>, vector<4x8x8xbf16>, vector<4x8x8xf32> -> vector<4x8x8xf32>
    "tpu.trace_stop"() : () -> ()
    %42 = arith.truncf %41 : vector<4x8x8xf32> to vector<4x8x8xbf16>
    %c0_29 = arith.constant 0 : index
    %c0_30 = arith.constant 0 : index
    %c0_31 = arith.constant 0 : index
    %43 = vector.load %arg9[%c0_29, %c0_30, %c0_31] : memref<4x8x32xbf16, #tpu.memory_space<vmem>>, vector<4x8x32xbf16>
    "tpu.trace_start"() <{level = 10 : i32, message = "hqe,hed->hqd"}> : () -> ()
    %cst_32 = arith.constant dense<0.000000e+00> : vector<4x8x32xf32>
    %44 = tpu.matmul %42, %43, %cst_32 {dimension_numbers = #tpu.dot_dimension_numbers<[2], [1], [1], [2], [0, 0, 0, 1, 1, 2], [0], [0]>} : vector<4x8x8xbf16>, vector<4x8x32xbf16>, vector<4x8x32xf32> -> vector<4x8x32xf32>
    "tpu.trace_stop"() : () -> ()
    %cst_33 = arith.constant dense<0.000000e+00> : vector<8x32xf32>
    %45 = vector.multi_reduction <add>, %44, %cst_33 [0] : vector<4x8x32xf32> to vector<8x32xf32>
    %c0_34 = arith.constant 0 : index
    %c0_35 = arith.constant 0 : index
    %46 = vector.load %arg10[%c0_34, %c0_35] : memref<1x32xf32, #tpu.memory_space<vmem>>, vector<1x32xf32>
    %47 = vector.broadcast %46 : vector<1x32xf32> to vector<8x32xf32>
    %48 = arith.addf %45, %47 : vector<8x32xf32>
    %49 = arith.addf %1, %48 : vector<8x32xf32>
    %c0_36 = arith.constant 0 : index
    %c0_37 = arith.constant 0 : index
    %50 = vector.load %arg11[%c0_36, %c0_37] : memref<1x32xf32, #tpu.memory_space<vmem>>, vector<1x32xf32>
    %c0_38 = arith.constant 0 : index
    %c0_39 = arith.constant 0 : index
    %51 = vector.load %arg12[%c0_38, %c0_39] : memref<1x32xf32, #tpu.memory_space<vmem>>, vector<1x32xf32>
    %cst_40 = arith.constant dense<0.000000e+00> : vector<8xf32>
    %52 = vector.multi_reduction <add>, %49, %cst_40 [1] : vector<8x32xf32> to vector<8xf32>
    %53 = vector.shape_cast %52 : vector<8xf32> to vector<8x1xf32>
    %cst_41 = arith.constant 3.200000e+01 : f32
    %54 = vector.broadcast %cst_41 : f32 to vector<8x1xf32>
    %55 = arith.divf %53, %54 : vector<8x1xf32>
    %56 = vector.broadcast %55 : vector<8x1xf32> to vector<8x32xf32>
    %57 = arith.subf %49, %56 : vector<8x32xf32>
    %58 = arith.mulf %57, %57 : vector<8x32xf32>
    %cst_42 = arith.constant dense<0.000000e+00> : vector<8xf32>
    %59 = vector.multi_reduction <add>, %58, %cst_42 [1] : vector<8x32xf32> to vector<8xf32>
    %60 = vector.shape_cast %59 : vector<8xf32> to vector<8x1xf32>
    %cst_43 = arith.constant 3.200000e+01 : f32
    %61 = vector.broadcast %cst_43 : f32 to vector<8x1xf32>
    %62 = arith.divf %60, %61 : vector<8x1xf32>
    %63 = vector.broadcast %55 : vector<8x1xf32> to vector<8x32xf32>
    %64 = arith.subf %49, %63 : vector<8x32xf32>
    %cst_44 = arith.constant 9.99999974E-6 : f32
    %65 = vector.broadcast %cst_44 : f32 to vector<8x1xf32>
    %66 = arith.addf %62, %65 : vector<8x1xf32>
    %67 = math.rsqrt %66 : vector<8x1xf32>
    %68 = vector.broadcast %67 : vector<8x1xf32> to vector<8x32xf32>
    %69 = arith.mulf %64, %68 : vector<8x32xf32>
    %70 = vector.broadcast %50 : vector<1x32xf32> to vector<8x32xf32>
    %71 = arith.mulf %69, %70 : vector<8x32xf32>
    %72 = vector.broadcast %51 : vector<1x32xf32> to vector<8x32xf32>
    %73 = arith.addf %71, %72 : vector<8x32xf32>
    %74 = arith.truncf %73 : vector<8x32xf32> to vector<8x32xbf16>
    %c0_45 = arith.constant 0 : index
    %c0_46 = arith.constant 0 : index
    %75 = vector.load %arg13[%c0_45, %c0_46] : memref<32x64xbf16, #tpu.memory_space<vmem>>, vector<32x64xbf16>
    %cst_47 = arith.constant dense<0.000000e+00> : vector<8x64xf32>
    %76 = tpu.matmul %74, %75, %cst_47 {dimension_numbers = #tpu.dot_dimension_numbers<[1], [0], [0], [1], [0, 0, 1, 1], [], []>} : vector<8x32xbf16>, vector<32x64xbf16>, vector<8x64xf32> -> vector<8x64xf32>
    %c0_48 = arith.constant 0 : index
    %c0_49 = arith.constant 0 : index
    %77 = vector.load %arg14[%c0_48, %c0_49] : memref<1x64xf32, #tpu.memory_space<vmem>>, vector<1x64xf32>
    %78 = vector.broadcast %77 : vector<1x64xf32> to vector<8x64xf32>
    %79 = arith.addf %76, %78 : vector<8x64xf32>
    %cst_50 = arith.constant 0.000000e+00 : f32
    %80 = vector.broadcast %cst_50 : f32 to vector<8x64xf32>
    %81 = arith.maximumf %79, %80 : vector<8x64xf32>
    %82 = arith.truncf %81 : vector<8x64xf32> to vector<8x64xbf16>
    %c0_51 = arith.constant 0 : index
    %c0_52 = arith.constant 0 : index
    %83 = vector.load %arg15[%c0_51, %c0_52] : memref<64x32xbf16, #tpu.memory_space<vmem>>, vector<64x32xbf16>
    %cst_53 = arith.constant dense<0.000000e+00> : vector<8x32xf32>
    %84 = tpu.matmul %82, %83, %cst_53 {dimension_numbers = #tpu.dot_dimension_numbers<[1], [0], [0], [1], [0, 0, 1, 1], [], []>} : vector<8x64xbf16>, vector<64x32xbf16>, vector<8x32xf32> -> vector<8x32xf32>
    %c0_54 = arith.constant 0 : index
    %c0_55 = arith.constant 0 : index
    %85 = vector.load %arg16[%c0_54, %c0_55] : memref<1x32xf32, #tpu.memory_space<vmem>>, vector<1x32xf32>
    %86 = vector.broadcast %85 : vector<1x32xf32> to vector<8x32xf32>
    %87 = arith.addf %84, %86 : vector<8x32xf32>
    %88 = arith.addf %73, %87 : vector<8x32xf32>
    %c0_56 = arith.constant 0 : index
    %c0_57 = arith.constant 0 : index
    %89 = vector.load %arg17[%c0_56, %c0_57] : memref<1x32xf32, #tpu.memory_space<vmem>>, vector<1x32xf32>
    %c0_58 = arith.constant 0 : index
    %c0_59 = arith.constant 0 : index
    %90 = vector.load %arg18[%c0_58, %c0_59] : memref<1x32xf32, #tpu.memory_space<vmem>>, vector<1x32xf32>
    %cst_60 = arith.constant dense<0.000000e+00> : vector<8xf32>
    %91 = vector.multi_reduction <add>, %88, %cst_60 [1] : vector<8x32xf32> to vector<8xf32>
    %92 = vector.shape_cast %91 : vector<8xf32> to vector<8x1xf32>
    %cst_61 = arith.constant 3.200000e+01 : f32
    %93 = vector.broadcast %cst_61 : f32 to vector<8x1xf32>
    %94 = arith.divf %92, %93 : vector<8x1xf32>
    %95 = vector.broadcast %94 : vector<8x1xf32> to vector<8x32xf32>
    %96 = arith.subf %88, %95 : vector<8x32xf32>
    %97 = arith.mulf %96, %96 : vector<8x32xf32>
    %cst_62 = arith.constant dense<0.000000e+00> : vector<8xf32>
    %98 = vector.multi_reduction <add>, %97, %cst_62 [1] : vector<8x32xf32> to vector<8xf32>
    %99 = vector.shape_cast %98 : vector<8xf32> to vector<8x1xf32>
    %cst_63 = arith.constant 3.200000e+01 : f32
    %100 = vector.broadcast %cst_63 : f32 to vector<8x1xf32>
    %101 = arith.divf %99, %100 : vector<8x1xf32>
    %102 = vector.broadcast %94 : vector<8x1xf32> to vector<8x32xf32>
    %103 = arith.subf %88, %102 : vector<8x32xf32>
    %cst_64 = arith.constant 9.99999974E-6 : f32
    %104 = vector.broadcast %cst_64 : f32 to vector<8x1xf32>
    %105 = arith.addf %101, %104 : vector<8x1xf32>
    %106 = math.rsqrt %105 : vector<8x1xf32>
    %107 = vector.broadcast %106 : vector<8x1xf32> to vector<8x32xf32>
    %108 = arith.mulf %103, %107 : vector<8x32xf32>
    %109 = vector.broadcast %89 : vector<1x32xf32> to vector<8x32xf32>
    %110 = arith.mulf %108, %109 : vector<8x32xf32>
    %111 = vector.broadcast %90 : vector<1x32xf32> to vector<8x32xf32>
    %112 = arith.addf %110, %111 : vector<8x32xf32>
    %c0_65 = arith.constant 0 : index
    %c0_66 = arith.constant 0 : index
    %c0_67 = arith.constant 0 : index
    %113 = vector.load %arg19[%c0_65, %c0_66, %c0_67] : memref<1x8x32xf32, #tpu.memory_space<vmem>>, vector<1x8x32xf32>
    %114 = vector.shape_cast %113 : vector<1x8x32xf32> to vector<8x32xf32>
    %115 = vector.shape_cast %112 : vector<8x32xf32> to vector<1x8x32xf32>
    tpu.vector_store %arg19[%c0_65, %c0_66, %c0_67], %115 {strides = array<i32>} : memref<1x8x32xf32, #tpu.memory_space<vmem>>, vector<1x8x32xf32>,
    return
  }
  func.func @transform_0(%arg0: i32) -> (i32, i32, i32) {
    %c0_i32 = arith.constant 0 : i32
    %c0_i32_0 = arith.constant 0 : i32
    %c0_i32_1 = arith.constant 0 : i32
    return %arg0, %c0_i32, %c0_i32_0 : i32, i32, i32
  }
  func.func @transform_1(%arg0: i32) -> (i32, i32) {
    %c0_i32 = arith.constant 0 : i32
    %c0_i32_0 = arith.constant 0 : i32
    %c0_i32_1 = arith.constant 0 : i32
    return %c0_i32, %c0_i32_0 : i32, i32
  }
  func.func @transform_2(%arg0: i32) -> (i32, i32, i32) {
    %c0_i32 = arith.constant 0 : i32
    %c0_i32_0 = arith.constant 0 : i32
    %c0_i32_1 = arith.constant 0 : i32
    %c0_i32_2 = arith.constant 0 : i32
    return %c0_i32, %c0_i32_0, %c0_i32_1 : i32, i32, i32
  }
  func.func @transform_3(%arg0: i32) -> (i32, i32, i32) {
    %c0_i32 = arith.constant 0 : i32
    %c0_i32_0 = arith.constant 0 : i32
    %c0_i32_1 = arith.constant 0 : i32
    %c0_i32_2 = arith.constant 0 : i32
    return %c0_i32, %c0_i32_0, %c0_i32_1 : i32, i32, i32
  }
  func.func @transform_4(%arg0: i32) -> (i32, i32, i32) {
    %c0_i32 = arith.constant 0 : i32
    %c0_i32_0 = arith.constant 0 : i32
    %c0_i32_1 = arith.constant 0 : i32
    %c0_i32_2 = arith.constant 0 : i32
    return %c0_i32, %c0_i32_0, %c0_i32_1 : i32, i32, i32
  }
  func.func @transform_5(%arg0: i32) -> (i32, i32, i32) {
    %c0_i32 = arith.constant 0 : i32
    %c0_i32_0 = arith.constant 0 : i32
    %c0_i32_1 = arith.constant 0 : i32
    %c0_i32_2 = arith.constant 0 : i32
    return %c0_i32, %c0_i32_0, %c0_i32_1 : i32, i32, i32
  }
  func.func @transform_6(%arg0: i32) -> (i32, i32, i32) {
    %c0_i32 = arith.constant 0 : i32
    %c0_i32_0 = arith.constant 0 : i32
    %c0_i32_1 = arith.constant 0 : i32
    %c0_i32_2 = arith.constant 0 : i32
    return %c0_i32, %c0_i32_0, %c0_i32_1 : i32, i32, i32
  }
  func.func @transform_7(%arg0: i32) -> (i32, i32, i32) {
    %c0_i32 = arith.constant 0 : i32
    %c0_i32_0 = arith.constant 0 : i32
    %c0_i32_1 = arith.constant 0 : i32
    %c0_i32_2 = arith.constant 0 : i32
    return %c0_i32, %c0_i32_0, %c0_i32_1 : i32, i32, i32
  }
  func.func @transform_8(%arg0: i32) -> (i32, i32, i32) {
    %c0_i32 = arith.constant 0 : i32
    %c0_i32_0 = arith.constant 0 : i32
    %c0_i32_1 = arith.constant 0 : i32
    %c0_i32_2 = arith.constant 0 : i32
    return %c0_i32, %c0_i32_0, %c0_i32_1 : i32, i32, i32
  }
  func.func @transform_9(%arg0: i32) -> (i32, i32) {
    %c0_i32 = arith.constant 0 : i32
    %c0_i32_0 = arith.constant 0 : i32
    %c0_i32_1 = arith.constant 0 : i32
    return %c0_i32, %c0_i32_0 : i32, i32
  }
  func.func @transform_10(%arg0: i32) -> (i32, i32) {
    %c0_i32 = arith.constant 0 : i32
    %c0_i32_0 = arith.constant 0 : i32
    %c0_i32_1 = arith.constant 0 : i32
    return %c0_i32, %c0_i32_0 : i32, i32
  }
  func.func @transform_11(%arg0: i32) -> (i32, i32) {
    %c0_i32 = arith.constant 0 : i32
    %c0_i32_0 = arith.constant 0 : i32
    %c0_i32_1 = arith.constant 0 : i32
    return %c0_i32, %c0_i32_0 : i32, i32
  }
  func.func @transform_12(%arg0: i32) -> (i32, i32) {
    %c0_i32 = arith.constant 0 : i32
    %c0_i32_0 = arith.constant 0 : i32
    %c0_i32_1 = arith.constant 0 : i32
    return %c0_i32, %c0_i32_0 : i32, i32
  }
  func.func @transform_13(%arg0: i32) -> (i32, i32) {
    %c0_i32 = arith.constant 0 : i32
    %c0_i32_0 = arith.constant 0 : i32
    %c0_i32_1 = arith.constant 0 : i32
    return %c0_i32, %c0_i32_0 : i32, i32
  }
  func.func @transform_14(%arg0: i32) -> (i32, i32) {
    %c0_i32 = arith.constant 0 : i32
    %c0_i32_0 = arith.constant 0 : i32
    %c0_i32_1 = arith.constant 0 : i32
    return %c0_i32, %c0_i32_0 : i32, i32
  }
  func.func @transform_15(%arg0: i32) -> (i32, i32) {
    %c0_i32 = arith.constant 0 : i32
    %c0_i32_0 = arith.constant 0 : i32
    %c0_i32_1 = arith.constant 0 : i32
    return %c0_i32, %c0_i32_0 : i32, i32
  }
  func.func @transform_16(%arg0: i32) -> (i32, i32) {
    %c0_i32 = arith.constant 0 : i32
    %c0_i32_0 = arith.constant 0 : i32
    %c0_i32_1 = arith.constant 0 : i32
    return %c0_i32, %c0_i32_0 : i32, i32
  }
  func.func @transform_17(%arg0: i32) -> (i32, i32) {
    %c0_i32 = arith.constant 0 : i32
    %c0_i32_0 = arith.constant 0 : i32
    %c0_i32_1 = arith.constant 0 : i32
    return %c0_i32, %c0_i32_0 : i32, i32
  }
  func.func @transform_18(%arg0: i32) -> (i32, i32, i32) {
    %c0_i32 = arith.constant 0 : i32
    %c0_i32_0 = arith.constant 0 : i32
    %c0_i32_1 = arith.constant 0 : i32
    return %arg0, %c0_i32, %c0_i32_0 : i32, i32, i32
  }
}

</mosaic_0001>

<bundles_post_ra>
// kernel: transformer_forward.5
= control target key start
LH: loop header
LB: loop body
LE: loop exit
PB: predicated region body
PF: predicated region fallthrough
CT: control target
= control target key end

     0   :  { %s449_s12 = smov 0   ;;  %s451_s13 = smov 0   ;;  %s488_s0 = inlined_call_operand.vmem [shape: f32[16,32], index: 0, kind: input, shape index: {}]   ;;  %s489_s1 = inlined_call_operand.vmem [shape: bf16[32,64], index: 1, kind: input, shape index: {}]   ;;  %s490_s2 = inlined_call_operand.vmem [shape: f32[1,64], index: 2, kind: input, shape index: {}]   ;;  %s491_s3 = inlined_call_operand.vmem [shape: f32[16,64], index: 3, kind: output, shape index: {}]  }
   0x1   :  { %s453_s14 = smov 0  }
   0x2 LB: > { %s25_s15 = sadd.s32 1, %s423_s13  ;;  %p364_p0 = scmp.ge.s32.totalorder %s427_s14, 1  ;;  %s427_s14 = sphi %s453_s14, %s13_s14   ;;  %s423_s13 = sphi %s451_s13, %s493_s13   ;;  %s419_s12 = sphi %s449_s12, %s492_s12  }
   0x3   : > { %p27_p1 = scmp.ge.s32.totalorder %s25_s15, 2  ;;  %p167_p2 = scmp.lt.s32.totalorder %s427_s14, 3 }
   0x5   : > { %s495_s15 = smov (%p27_p1, %s25_s15), 0  ;;  %p168_p3 = pnand %p364_p0, %p167_p2 }
   0x6   : > { %p199_p4 = scmp.lt.s32.totalorder (!%p168_p3), %s419_s12, 1 }
   0x7   : > { %171 = sbr.rel (%p168_p3) target bundleno = 154 (0x9a), region = 32 }
   0xc   : > { %v379_v0 = vld [vmem:[%s489_s1 + $0x8] sm:$0xff]  ;;  %v378_v1 = vld [vmem:[%s489_s1] sm:$0xff]  ;;  %s497_s12 = smov (!%p199_p4, %s419_s12), 1  ;;  %vm240_vm0 = vcmask 261120   ;;  %vm257_vm1 = vcmask 523264  }
   0xd   : > { %250 = vmatpush.bf16.msra.mxu0 %v379_v0  ;;  %s365_s20 = sshll.u32 %s497_s12, 3  ;;  %v404_v4 = vld [vmem:[%s490_s2] ss:$0 sm:$0xff] }
   0xe   : > { %s202_s23 = scalar_lea.vmem %s488_s0, %s365_s20  ;;  %s216_s28 = scalar_lea.vmem %s491_s3, %s365_s20 }
   0xf   : > { %v218_v2 = vld [vmem:[%s202_s23] sm:$0xff] }
  0x10   : > { %v219_v3 = vpack.c.bf16 %v218_v2, %v218_v2 }
  0x11   : > { %251 = vmatpush.bf16.msra.mxu0 %v378_v1 }
  0x14   : > { %375 = vmatmul.msk.bf16.vlgmr.msra.gmra.mxu0 %vm240_vm0, %v219_v3 }
  0x91   : > { %v253_v5 = vpop.f32.mrf.mxu0 }
  0x92   : > { %v254_v6 = vadd.f32 %v404_v4, %v253_v5 }
  0x94   : > { %258 = vst.msk [vmem:[%s216_s28] sm:$0xff] %vm257_vm1, %v254_v6 }
  0x99   : > { %v255_v7 = vpop.f32.mrf.mxu0 }
  0x9a PF: > { %s13_s14 = sadd.s32 1, %s427_s14   ;;  %s492_s12 = smov %s423_s13 }
  0x9b   : > { %p10_p5 = scmp.ge.s32.totalorder %s13_s14, 4   ;;  %s493_s13 = smov %s495_s15 }
  0x9d   :  { %12 = sbr.rel (!%p10_p5) target bundleno = 2 (0x2), region = 68 }

// kernel: transformer_forward.4
= control target key start
LH: loop header
LB: loop body
LE: loop exit
PB: predicated region body
PF: predicated region fallthrough
CT: control target
= control target key end

     0   :  { %s1847_s27 = smov 0   ;;  %s2092_s0 = inlined_call_operand.vmem [shape: f32[2,8,32], index: 0, kind: input, shape index: {}]   ;;  %s2093_s1 = inlined_call_operand.vmem [shape: f32[8,8], index: 1, kind: input, shape index: {}]   ;;  %s2094_s2 = inlined_call_operand.vmem [shape: bf16[4,32,8], index: 2, kind: input, shape index: {}]   ;;  %s2095_s3 = inlined_call_operand.vmem [shape: f32[4,1,8], index: 3, kind: input, shape index: {}]   ;;  %s2096_s4 = inlined_call_operand.vmem [shape: bf16[4,32,8], index: 4, kind: input, shape index: {}]   ;;  %s2097_s5 = inlined_call_operand.vmem [shape: f32[4,1,8], index: 5, kind: input, shape index: {}]   ;;  %s2098_s6 = inlined_call_operand.vmem [shape: bf16[4,32,8], index: 6, kind: input, shape index: {}]   ;;  %s2099_s7 = inlined_call_operand.vmem [shape: f32[4,1,8], index: 7, kind: input, shape index: {}]   ;;  %s2100_s8 = inlined_call_operand.vmem [shape: bf16[4,8,32], index: 8, kind: input, shape index: {}]   ;;  %s2101_s9 = inlined_call_operand.vmem [shape: f32[1,32], index: 9, kind: input, shape index: {}]   ;;  %s2102_s10 = inlined_call_operand.vmem [shape: f32[1,32], index: 10, kind: input, shape index: {}]   ;;  %s2103_s11 = inlined_call_operand.vmem [shape: f32[1,32], index: 11, kind: input, shape index: {}]   ;;  %s2104_s12 = inlined_call_operand.vmem [shape: bf16[32,64], index: 12, kind: input, shape index: {}]   ;;  %s2105_s13 = inlined_call_operand.vmem [shape: f32[1,64], index: 13, kind: input, shape index: {}]   ;;  %s2106_s14 = inlined_call_operand.vmem [shape: bf16[64,32], index: 14, kind: input, shape index: {}]   ;;  %s2107_s15 = inlined_call_operand.vmem [shape: f32[1,32], index: 15, kind: input, shape index: {}]   ;;  %s2108_s16 = inlined_call_operand.vmem [shape: f32[1,32], index: 16, kind: input, shape index: {}]   ;;  %s2109_s17 = inlined_call_operand.vmem [shape: f32[1,32], index: 17, kind: input, shape index: {}]   ;;  %s2110_s18 = inlined_call_operand.vmem [shape: f32[2,8,32], index: 18, kind: output, shape index: {}]  }
   0x1   :  { %2113 = sst [smem:[#allocation3_spill]] %s2092_s0 }
   0x2   :  { %2114 = sst [smem:[#allocation4_spill]] %s2093_s1 }
   0x3   :  { %2115 = sst [smem:[#allocation5_spill]] %s2094_s2 }
   0x4 LB: > { %2116 = sst [smem:[#allocation2_spill]] %s1749_s27  ;;  %s1508_s28 = sadd.s32 4294967295, %s1749_s27   ;;  %s1749_s27 = sphi %s1847_s27, %s28_s27  }
   0x5   : > { %p1512_p0 = scmp.ge.s32.totalorder %s1749_s27, 1  ;;  %p511_p1 = scmp.lt.s32.totalorder %s1749_s27, 3 }
   0x7   : > { %p512_p2 = pnand %p1512_p0, %p511_p1 }
   0x8   : > { %s2117_s0 = sld [smem:[#allocation5_spill]] (!%p512_p2)  ;;  %p563_p3 = scmp.lt.s32.totalorder (!%p512_p2), %s1508_s28, 1 }
   0x9   : > { %515 = sbr.rel (%p512_p2) target bundleno = 1656 (0x678), region = 92  ;;  %s2118_s26 = sld [smem:[#allocation3_spill]] (!%p512_p2) }
   0xa   : > { %s2119_s2 = sld [smem:[#allocation4_spill]] (!%p512_p2) }
   0xe   : > { %v1664_v0 = vld [vmem:[%s2117_s0 + $0x8] sm:$0xff]  ;;  %v1666_v1 = vld [vmem:[%s2117_s0 + $0x18] sm:$0xff]  ;;  %v1663_v4 = vld [vmem:[%s2117_s0] sm:$0xff]  ;;  %s2122_s28 = smov (!%p563_p3, %s1508_s28), 1  ;;  %vm618_vm0 = vcmask 261120   ;;  %vm987_vm1 = vcmask 64512  }
   0xf   : > { %v1668_v2 = vld [vmem:[%s2117_s0 + $0x28] sm:$0xff]  ;;  %v1670_v3 = vld [vmem:[%s2117_s0 + $0x38] sm:$0xff]  ;;  %628 = vmatpush.bf16.msra.mxu0 %v1664_v0  ;;  %653 = vmatpush.bf16.msra.mxu1 %v1666_v1  ;;  %v1665_v5 = vld [vmem:[%s2117_s0 + $0x10] sm:$0xff]  ;;  %s1513_s20 = sshll.u32 %s2122_s28, 3  ;;  %vm1119_vm2 = vcmask 1043456   ;;  %vm1404_vm7 = vcmask 523264  }
  0x10   : > { %678 = vmatpush.bf16.msra.mxu2 %v1668_v2  ;;  %703 = vmatpush.bf16.msra.mxu3 %v1670_v3  ;;  %v1667_v6 = vld [vmem:[%s2117_s0 + $0x20] sm:$0xff]  ;;  %v1669_v7 = vld [vmem:[%s2117_s0 + $0x30] sm:$0xff]  ;;  %v1672_v8 = vld [vmem:[%s2096_s4 + $0x8] sm:$0xff]  ;;  %s566_s27 = scalar_lea.vmem %s2118_s26, %s1513_s20  ;;  %s570_s23 = scalar_lea.vmem %s2110_s18, %s1513_s20 }
  0x11   : > { %v1674_v9 = vld [vmem:[%s2096_s4 + $0x18] sm:$0xff]  ;;  %v1676_v10 = vld [vmem:[%s2096_s4 + $0x28] sm:$0xff]  ;;  %v1899_v12 = vld [vmem:[%s566_s27] sm:$0xff] }
  0x12   : > { %v1678_v11 = vld [vmem:[%s2096_s4 + $0x38] sm:$0xff]  ;;  %v1671_v13 = vld [vmem:[%s2096_s4] sm:$0xff]  ;;  %v1673_v14 = vld [vmem:[%s2096_s4 + $0x10] sm:$0xff]  ;;  %v573_v15 = vpack.c.bf16 %v1899_v12, %v1899_v12 }
  0x13   : > { %629 = vmatpush.bf16.msra.mxu0 %v1663_v4  ;;  %654 = vmatpush.bf16.msra.mxu1 %v1665_v5  ;;  %v1675_v16 = vld [vmem:[%s2096_s4 + $0x20] sm:$0xff]  ;;  %v1677_v17 = vld [vmem:[%s2096_s4 + $0x30] sm:$0xff]  ;;  %v1684_v18 = vld [vmem:[%s2098_s6 + $0x28] sm:$0xff] }
  0x14   : > { %679 = vmatpush.bf16.msra.mxu2 %v1667_v6  ;;  %704 = vmatpush.bf16.msra.mxu3 %v1669_v7  ;;  %v1680_v19 = vld [vmem:[%s2098_s6 + $0x8] sm:$0xff]  ;;  %v1682_v20 = vld [vmem:[%s2098_s6 + $0x18] sm:$0xff]  ;;  %v1683_v21 = vld [vmem:[%s2098_s6 + $0x20] sm:$0xff] }
  0x15   : > { %v1679_v22 = vld [vmem:[%s2098_s6] sm:$0xff]  ;;  %v1681_v23 = vld [vmem:[%s2098_s6 + $0x10] sm:$0xff]  ;;  %v1686_v24 = vld [vmem:[%s2098_s6 + $0x38] sm:$0xff] }
  0x16   : > { %1523 = vmatmul.msk.bf16.vlgmr.msra.gmra.mxu0 %vm618_vm0, %v573_v15  ;;  %1532 = vmatmul.msk.bf16.vlgmr.msra.gmra.mxu1 %vm618_vm0, %v573_v15  ;;  %v1685_v25 = vld [vmem:[%s2098_s6 + $0x30] sm:$0xff]  ;;  %v1703_v32 = vld [vmem:[%s2095_s3 + $0x1] ss:$0 sm:$0xff]  ;;  %v1706_v33 = vld [vmem:[%s2097_s5] ss:$0 sm:$0xff] }
  0x17   : > { %764 = vmatpush.bf16.msrb.mxu0 %v1672_v8  ;;  %789 = vmatpush.bf16.msrb.mxu1 %v1674_v9  ;;  %v1707_v34 = vld [vmem:[%s2097_s5 + $0x1] ss:$0 sm:$0xff]  ;;  %v1702_v37 = vld [vmem:[%s2095_s3] ss:$0 sm:$0xff]  ;;  %v1708_v46 = vld [vmem:[%s2097_s5 + $0x2] ss:$0 sm:$0xff] }
  0x18   : > { %1541 = vmatmul.msk.bf16.vlgmr.msra.gmra.mxu2 %vm618_vm0, %v573_v15  ;;  %1550 = vmatmul.msk.bf16.vlgmr.msra.gmra.mxu3 %vm618_vm0, %v573_v15  ;;  %v1709_v47 = vld [vmem:[%s2097_s5 + $0x3] ss:$0 sm:$0xff]  ;;  %v1704_v51 = vld [vmem:[%s2095_s3 + $0x2] ss:$0 sm:$0xff] }
  0x19   : > { %814 = vmatpush.bf16.msrb.mxu2 %v1676_v10  ;;  %839 = vmatpush.bf16.msrb.mxu3 %v1678_v11  ;;  %v1705_v52 = vld [vmem:[%s2095_s3 + $0x3] ss:$0 sm:$0xff]  ;;  %v1710_v10 = vld [vmem:[%s2099_s7] ss:$0 sm:$0xff]  ;;  %v1711_v11 = vld [vmem:[%s2099_s7 + $0x1] ss:$0 sm:$0xff] }
  0x1b   : > { %765 = vmatpush.bf16.msrb.mxu0 %v1671_v13  ;;  %790 = vmatpush.bf16.msrb.mxu1 %v1673_v14 }
  0x1d   : > { %815 = vmatpush.bf16.msrb.mxu2 %v1675_v16  ;;  %840 = vmatpush.bf16.msrb.mxu3 %v1677_v17  ;;  %v1712_v16 = vld [vmem:[%s2099_s7 + $0x2] ss:$0 sm:$0xff] }
  0x1f   : > { %896 = vmatpush.bf16.msra.mxu0 %v1680_v19  ;;  %921 = vmatpush.bf16.msra.mxu1 %v1682_v20 }
  0x21   : > { %946 = vmatpush.bf16.msra.mxu2 %v1684_v18  ;;  %971 = vmatpush.bf16.msra.mxu3 %v1686_v24 }
  0x23   : > { %897 = vmatpush.bf16.msra.mxu0 %v1679_v22  ;;  %922 = vmatpush.bf16.msra.mxu1 %v1681_v23 }
  0x25   : > { %947 = vmatpush.bf16.msra.mxu2 %v1683_v21  ;;  %972 = vmatpush.bf16.msra.mxu3 %v1685_v25 }
  0x26   : > { %1559 = vmatmul.msk.bf16.vlgmr.msrb.gmra.mxu0 %vm618_vm0, %v573_v15  ;;  %1568 = vmatmul.msk.bf16.vlgmr.msrb.gmra.mxu1 %vm618_vm0, %v573_v15 }
  0x28   : > { %1577 = vmatmul.msk.bf16.vlgmr.msrb.gmra.mxu2 %vm618_vm0, %v573_v15  ;;  %1586 = vmatmul.msk.bf16.vlgmr.msrb.gmra.mxu3 %vm618_vm0, %v573_v15 }
  0x36   : > { %1595 = vmatmul.msk.bf16.vlgmr.msra.gmra.mxu0 %vm618_vm0, %v573_v15  ;;  %1604 = vmatmul.msk.bf16.vlgmr.msra.gmra.mxu1 %vm618_vm0, %v573_v15 }
  0x38   : > { %1613 = vmatmul.msk.bf16.vlgmr.msra.gmra.mxu2 %vm618_vm0, %v573_v15  ;;  %1622 = vmatmul.msk.bf16.vlgmr.msra.gmra.mxu3 %vm618_vm0, %v573_v15 }
  0x93   : > { %v631_v26 = vpop.f32.mrf.mxu0  ;;  %v656_v27 = vpop.f32.mrf.mxu1 }
  0x94   : > { %v657_v40 = vadd.f32 %v1703_v32, %v656_v27  ;;  %v632_v45 = vadd.f32 %v1702_v37, %v631_v26 }
  0x96   : > { %v711_v48 = vmul.f32 0.35355338, %v657_v40  ;;  %v710_v55 = vmul.f32 0.35355338, %v632_v45 }
  0x98   : > { %v979_v60 = vpack.c.bf16 %v711_v48, %v711_v48  ;;  %v978_v1 = vpack.c.bf16 %v710_v55, %v710_v55 }
  0x9b   : > { %v681_v28 = vpop.f32.mrf.mxu2  ;;  %v706_v29 = vpop.f32.mrf.mxu3 }
  0x9c   : > { %v633_v30 = vpop.f32.mrf.mxu0  ;;  %v658_v31 = vpop.f32.mrf.mxu1  ;;  %v682_v61 = vadd.f32 %v1704_v51, %v681_v28  ;;  %v707_v62 = vadd.f32 %v1705_v52, %v706_v29  ;;  %v1713_v28 = vld [vmem:[%s2099_s7 + $0x3] ss:$0 sm:$0xff] }
  0x9e   : > { %v712_v4 = vmul.f32 0.35355338, %v682_v61  ;;  %v713_v5 = vmul.f32 0.35355338, %v707_v62 }
  0xa0   : > { %v980_v8 = vpack.c.bf16 %v712_v4, %v712_v4  ;;  %v981_v9 = vpack.c.bf16 %v713_v5, %v713_v5 }
  0xa3   : > { %v683_v35 = vpop.f32.mrf.mxu2  ;;  %v708_v36 = vpop.f32.mrf.mxu3 }
  0xa4   : > { %v767_v38 = vpop.f32.mrf.mxu0  ;;  %v792_v39 = vpop.f32.mrf.mxu1  ;;  %v986_v35 = vld [vmem:[%s2119_s2] sm:$0xff] }
  0xa5   : > { %v768_v41 = vadd.f32 %v1706_v33, %v767_v38  ;;  %v793_v42 = vadd.f32 %v1707_v34, %v792_v39 }
  0xa7   : > { %v982_v43 = vpack.c.bf16 %v768_v41, %v768_v41  ;;  %v983_v44 = vpack.c.bf16 %v793_v42, %v793_v42 }
  0xa9   : > { %v992_v49 = vsel %vm987_vm1, %v982_v43, 0  ;;  %v1011_v50 = vsel %vm987_vm1, %v983_v44, 0 }
  0xaa   : > { %1001 = vmatpush.bf16.xpose.msrb.mxu0 %v992_v49  ;;  %1020 = vmatpush.bf16.xpose.msrb.mxu1 %v1011_v50 }
  0xab   : > { %v817_v53 = vpop.f32.mrf.mxu2  ;;  %v842_v54 = vpop.f32.mrf.mxu3 }
  0xac   : > { %v818_v56 = vadd.f32 %v1708_v46, %v817_v53  ;;  %v843_v57 = vadd.f32 %v1709_v47, %v842_v54  ;;  %v769_v58 = vpop.f32.mrf.mxu0  ;;  %v794_v59 = vpop.f32.mrf.mxu1 }
  0xae   : > { %v984_v63 = vpack.c.bf16 %v818_v56, %v818_v56  ;;  %v985_v0 = vpack.c.bf16 %v843_v57, %v843_v57 }
  0xb0   : > { %v1030_v2 = vsel %vm987_vm1, %v984_v63, 0  ;;  %v1049_v3 = vsel %vm987_vm1, %v985_v0, 0 }
  0xb1   : > { %1039 = vmatpush.bf16.xpose.msrb.mxu2 %v1030_v2  ;;  %1058 = vmatpush.bf16.xpose.msrb.mxu3 %v1049_v3 }
  0xb2   : > { %1623 = vmatmul.msk.bf16.vlgmr.msrb.gmra.mxu0 %vm987_vm1, %v978_v1  ;;  %1624 = vmatmul.msk.bf16.vlgmr.msrb.gmra.mxu1 %vm987_vm1, %v979_v60 }
  0xb3   : > { %v819_v6 = vpop.f32.mrf.mxu2  ;;  %v844_v7 = vpop.f32.mrf.mxu3 }
  0xb4   : > { %v899_v13 = vpop.f32.mrf.mxu0  ;;  %v924_v15 = vpop.f32.mrf.mxu1 }
  0xb5   : > { %v900_v14 = vadd.f32 %v1710_v10, %v899_v13  ;;  %v925_v17 = vadd.f32 %v1711_v11, %v924_v15 }
  0xb7   : > { %v1112_v18 = vpack.c.bf16 %v900_v14, %v900_v14  ;;  %v1113_v19 = vpack.c.bf16 %v925_v17, %v925_v17 }
  0xb8   : > { %1625 = vmatmul.msk.bf16.vlgmr.msrb.gmra.mxu2 %vm987_vm1, %v980_v8  ;;  %1626 = vmatmul.msk.bf16.vlgmr.msrb.gmra.mxu3 %vm987_vm1, %v981_v9 }
  0xb9   : > { %v1121_v21 = vsel %vm1119_vm2, %v1112_v18, 0  ;;  %v1140_v23 = vsel %vm1119_vm2, %v1113_v19, 0 }
  0xba   : > { %1130 = vmatpush.bf16.msra.mxu0 %v1121_v21  ;;  %1149 = vmatpush.bf16.msra.mxu1 %v1140_v23 }
  0xbb   : > { %v949_v20 = vpop.f32.mrf.mxu2  ;;  %v974_v29 = vpop.f32.mrf.mxu3 }
  0xbc   : > { %v950_v22 = vadd.f32 %v1712_v16, %v949_v20  ;;  %v901_v25 = vpop.f32.mrf.mxu0  ;;  %v926_v26 = vpop.f32.mrf.mxu1  ;;  %v975_v31 = vadd.f32 %v1713_v28, %v974_v29  ;;  %v1199_v29 = vld [vmem:[%s2100_s8 + $0x8] sm:$0xf] }
  0xbd   : > { %v1197_v25 = vld [vmem:[%s2100_s8] sm:$0xf] }
  0xbe   : > { %v1114_v24 = vpack.c.bf16 %v950_v22, %v950_v22  ;;  %v1115_v32 = vpack.c.bf16 %v975_v31, %v975_v31  ;;  %v1205_v26 = vsel %vm1119_vm2, %v1197_v25, 0  ;;  %v1200_v31 = vld [vmem:[%s2100_s8 + $0xc] sm:$0xf]  ;;  %v1715_v25 = vld [vmem:[%s2102_s10] ss:$0 sm:$0xff] }
  0xbf   : > { %1214 = vmatpush.bf16.msrb.mxu0 %v1205_v26 }
  0xc0   : > { %v1159_v27 = vsel %vm1119_vm2, %v1114_v24, 0  ;;  %v1178_v33 = vsel %vm1119_vm2, %v1115_v32, 0  ;;  %v1262_v32 = vsel %vm1119_vm2, %v1200_v31, 0 }
  0xc1   : > { %1168 = vmatpush.bf16.msra.mxu2 %v1159_v27  ;;  %1187 = vmatpush.bf16.msra.mxu3 %v1178_v33  ;;  %v1198_v27 = vld [vmem:[%s2100_s8 + $0x4] sm:$0xf] }
  0xc2   : > { %v1224_v28 = vsel %vm1119_vm2, %v1198_v27, 0  ;;  %v1716_v27 = vld [vmem:[%s2103_s11] ss:$0 sm:$0xff] }
  0xc3   : > { %v951_v30 = vpop.f32.mrf.mxu2  ;;  %v976_v34 = vpop.f32.mrf.mxu3  ;;  %1233 = vmatpush.bf16.msrb.mxu1 %v1224_v28 }
  0xc4   : > { %v1243_v30 = vsel %vm1119_vm2, %v1199_v29, 0 }
  0xc5   : > { %1252 = vmatpush.bf16.msrb.mxu2 %v1243_v30  ;;  %1271 = vmatpush.bf16.msrb.mxu3 %v1262_v32  ;;  %v1690_v32 = vld [vmem:[%s2106_s14 + $0x8] sm:$0xff] }
 0x12f   : > { %v1003_v36 = vpop.f32.mrf.mxu0  ;;  %v1022_v37 = vpop.f32.mrf.mxu1 }
 0x130   : > { %v1004_v38 = vadd.f32 %v1003_v36, %v986_v35  ;;  %v1023_v40 = vadd.f32 %v1022_v37, %v986_v35 }
 0x132   : > { %v1064_v39 = vsel %vm987_vm1, %v1004_v38, -inf  ;;  %v1067_v43 = vsel %vm987_vm1, %v1023_v40, -inf }
 0x133   : > { %1065 = vmax.xlane.f32.xlu1 %v1064_v39 }
 0x137   : > { %v1005_v41 = vpop.f32.mrf.mxu0  ;;  %v1024_v42 = vpop.f32.mrf.mxu1 }
 0x13b   : > { %v1041_v44 = vpop.f32.mrf.mxu2  ;;  %v1060_v45 = vpop.f32.mrf.mxu3  ;;  %1068 = vmax.xlane.f32.xlu1 %v1067_v43 }
 0x13c   : > { %v1042_v46 = vadd.f32 %v1041_v44, %v986_v35  ;;  %v1061_v48 = vadd.f32 %v1060_v45, %v986_v35 }
 0x13e   : > { %v1070_v47 = vsel %vm987_vm1, %v1042_v46, -inf  ;;  %v1073_v51 = vsel %vm987_vm1, %v1061_v48, -inf }
 0x13f   : > { %1071 = vmax.xlane.f32.xlu0 %v1070_v47 }
 0x143   : > { %v1043_v49 = vpop.f32.mrf.mxu2  ;;  %v1062_v50 = vpop.f32.mrf.mxu3 }
 0x147   : > { %1074 = vmax.xlane.f32.xlu0 %v1073_v51 }
 0x1a6   : > { %v1066_v52 = vpop.xlane.xlu1 %1065 }
 0x1a7   : > { %v1076_v53 = vsub.f32 %v1004_v38, %v1066_v52 }
 0x1a9   : > { %v1080_v54 = vmul.f32 1.442695, %v1076_v53 }
 0x1ab   : > { %1721 = vpow2.f32 %v1080_v54 }
 0x1ae   : > { %v1069_v55 = vpop.xlane.xlu1 %1068 }
 0x1af   : > { %v1077_v56 = vsub.f32 %v1023_v40, %v1069_v55 }
 0x1b1   : > { %v1722_v57 = vpop.eup %1721  ;;  %v1082_v58 = vmul.f32 1.442695, %v1077_v56 }
 0x1b2   : > { %v1072_v59 = vpop.xlane.xlu0 %1071  ;;  %v1088_v60 = vsel %vm987_vm1, %v1722_v57, 0.0 }
 0x1b3   : > { %1723 = vpow2.f32 %v1082_v58  ;;  %v1078_v61 = vsub.f32 %v1042_v46, %v1072_v59  ;;  %1089 = vadd.xlane.f32.xlu0 %v1088_v60 }
 0x1b5   : > { %v1084_v62 = vmul.f32 1.442695, %v1078_v61 }
 0x1b7   : > { %1725 = vpow2.f32 %v1084_v62 }
 0x1b9   : > { %v1724_v63 = vpop.eup %1723 }
 0x1ba   : > { %v1075_v0 = vpop.xlane.xlu0 %1074  ;;  %v1091_v1 = vsel %vm987_vm1, %v1724_v63, 0.0 }
 0x1bb   : > { %v1079_v2 = vsub.f32 %v1061_v48, %v1075_v0  ;;  %1092 = vadd.xlane.f32.xlu1 %v1091_v1  ;;  %v1751_v0 = vmov 32.0  }
 0x1bd   : > { %v1726_v3 = vpop.eup %1725  ;;  %v1086_v4 = vmul.f32 1.442695, %v1079_v2 }
 0x1be   : > { %v1094_v5 = vsel %vm987_vm1, %v1726_v3, 0.0 }
 0x1bf   : > { %1727 = vpow2.f32 %v1086_v4  ;;  %1095 = vadd.xlane.f32.xlu2 %v1094_v5 }
 0x1c5   : > { %v1728_v6 = vpop.eup %1727 }
 0x1c6   : > { %v1097_v7 = vsel %vm987_vm1, %v1728_v6, 0.0 }
 0x1c7   : > { %1098 = vadd.xlane.f32.xlu2 %v1097_v7 }
 0x226   : > { %v1090_v8 = vpop.xlane.xlu0 %1089 }
 0x227   : > { %1729 = vrcp.f32 %v1090_v8 }
 0x22d   : > { %v1730_v9 = vpop.eup %1729 }
 0x22e   : > { %v1104_v10 = vmul.f32 %v1730_v9, %v1722_v57  ;;  %v1093_v11 = vpop.xlane.xlu1 %1092  ;;  %v1714_v57 = vld [vmem:[%s2101_s9] ss:$0 sm:$0xff] }
 0x22f   : > { %1731 = vrcp.f32 %v1093_v11 }
 0x230   : > { %v1108_v13 = vpack.c.bf16 %v1104_v10, %v1104_v10 }
 0x232   : > { %v1096_v14 = vpop.xlane.xlu2 %1095  ;;  %1627 = vmatmul.msk.bf16.vlgmr.msra.gmra.mxu0 %vm987_vm1, %v1108_v13  ;;  %v1687_v13 = vld [vmem:[%s2104_s12] sm:$0xff] }
 0x233   : > { %1733 = vrcp.f32 %v1096_v14  ;;  %v1692_v14 = vld [vmem:[%s2106_s14 + $0x18] sm:$0xff] }
 0x235   : > { %v1732_v15 = vpop.eup %1731 }
 0x236   : > { %v1105_v16 = vmul.f32 %v1732_v15, %v1724_v63 }
 0x238   : > { %v1109_v17 = vpack.c.bf16 %v1105_v16, %v1105_v16 }
 0x239   : > { %v1734_v18 = vpop.eup %1733 }
 0x23a   : > { %v1106_v19 = vmul.f32 %v1734_v18, %v1726_v3  ;;  %v1099_v20 = vpop.xlane.xlu2 %1098  ;;  %1628 = vmatmul.msk.bf16.vlgmr.msra.gmra.mxu1 %vm987_vm1, %v1109_v17  ;;  %v1691_v17 = vld [vmem:[%s2106_s14 + $0x10] sm:$0xff] }
 0x23b   : > { %1735 = vrcp.f32 %v1099_v20  ;;  %1412 = vmatpush.bf16.msra.mxu1 %v1692_v14 }
 0x23c   : > { %v1110_v21 = vpack.c.bf16 %v1106_v19, %v1106_v19  ;;  %1737 = vrcp.f32 %v1751_v0 }
 0x23e   : > { %1629 = vmatmul.msk.bf16.vlgmr.msra.gmra.mxu2 %vm987_vm1, %v1110_v21 }
 0x23f   : > { %1413 = vmatpush.bf16.msra.mxu1 %v1691_v17 }
 0x241   : > { %v1736_v22 = vpop.eup %1735 }
 0x242   : > { %v1107_v23 = vmul.f32 %v1736_v22, %v1728_v6  ;;  %v1738_v1 = vpop.eup %1737 }
 0x243   : > { %v1296_v2 = vmul.f32 32.0, %v1738_v1  ;;  %vm1300_vm3 = vweird.f32 %v1738_v1  ;;  %1414 = vmatpush.bf16.msra.mxu1 %v1690_v32 }
 0x244   : > { %v1111_v24 = vpack.c.bf16 %v1107_v23, %v1107_v23 }
 0x245   : > { %v1297_v3 = vsub.f32 1.0, %v1296_v2 }
 0x246   : > { %1630 = vmatmul.msk.bf16.vlgmr.msra.gmra.mxu3 %vm987_vm1, %v1111_v24 }
 0x247   : > { %v1298_v4 = vmul.f32 %v1738_v1, %v1297_v3 }
 0x249   : > { %v1299_v5 = vadd.f32 %v1738_v1, %v1298_v4 }
 0x24b   : > { %v1301_v6 = vsel %vm1300_vm3, %v1738_v1, %v1299_v5 }
 0x2af   : > { %v1132_v33 = vpop.f32.mrf.mxu0 }
 0x2b0   : > { %v1193_v34 = vpack.c.bf16 %v1132_v33, %v1132_v33  ;;  %v1689_v33 = vld [vmem:[%s2106_s14] sm:$0xff] }
 0x2b1   : > { %1415 = vmatpush.bf16.msra.mxu1 %v1689_v33 }
 0x2b2   : > { %1631 = vmatmul.msk.bf16.vlgmr.msrb.gmra.mxu0 %vm987_vm1, %v1193_v34  ;;  %v1717_v34 = vld [vmem:[%s2105_s13] ss:$0 sm:$0xff] }
 0x2b7   : > { %v1134_v35 = vpop.f32.mrf.mxu0  ;;  %v1151_v36 = vpop.f32.mrf.mxu1 }
 0x2b8   : > { %v1194_v37 = vpack.c.bf16 %v1151_v36, %v1151_v36 }
 0x2ba   : > { %1632 = vmatmul.msk.bf16.vlgmr.msrb.gmra.mxu1 %vm987_vm1, %v1194_v37 }
 0x2bf   : > { %v1153_v38 = vpop.f32.mrf.mxu1 }
 0x2c1   : > { %v1170_v39 = vpop.f32.mrf.mxu2 }
 0x2c2   : > { %v1195_v40 = vpack.c.bf16 %v1170_v39, %v1170_v39 }
 0x2c4   : > { %1633 = vmatmul.msk.bf16.vlgmr.msrb.gmra.mxu2 %vm987_vm1, %v1195_v40  ;;  %v1718_v40 = vld [vmem:[%s2107_s15] ss:$0 sm:$0xff] }
 0x2c9   : > { %v1172_v41 = vpop.f32.mrf.mxu2  ;;  %v1189_v42 = vpop.f32.mrf.mxu3 }
 0x2ca   : > { %v1196_v43 = vpack.c.bf16 %v1189_v42, %v1189_v42 }
 0x2cc   : > { %1634 = vmatmul.msk.bf16.vlgmr.msrb.gmra.mxu3 %vm987_vm1, %v1196_v43 }
 0x2d1   : > { %v1191_v44 = vpop.f32.mrf.mxu3 }
 0x32f   : > { %v1216_v45 = vpop.f32.mrf.mxu0 }
 0x330   : > { %v1277_v51 = vsel %vm618_vm0, %v1216_v45, 0.0 }
 0x337   : > { %v1218_v46 = vpop.f32.mrf.mxu0  ;;  %v1235_v47 = vpop.f32.mrf.mxu1 }
 0x338   : > { %v1278_v50 = vsel %vm618_vm0, %v1235_v47, 0.0 }
 0x339   : > { %v1279_v53 = vadd.f32 %v1278_v50, %v1277_v51 }
 0x33f   : > { %v1237_v48 = vpop.f32.mrf.mxu1 }
 0x347   : > { %v1254_v49 = vpop.f32.mrf.mxu2 }
 0x348   : > { %v1280_v52 = vsel %vm618_vm0, %v1254_v49, 0.0 }
 0x349   : > { %v1281_v54 = vadd.f32 %v1280_v52, %v1279_v53 }
 0x34f   : > { %v1256_v55 = vpop.f32.mrf.mxu2  ;;  %v1273_v56 = vpop.f32.mrf.mxu3 }
 0x350   : > { %v1282_v58 = vsel %vm618_vm0, %v1273_v56, 0.0 }
 0x351   : > { %v1283_v59 = vadd.f32 %v1282_v58, %v1281_v54 }
 0x353   : > { %v1288_v60 = vadd.f32 %v1714_v57, %v1283_v59 }
 0x355   : > { %v1289_v61 = vadd.f32 %v1288_v60, %v1899_v12  ;;  %v1688_v12 = vld [vmem:[%s2104_s12 + $0x8] sm:$0xff]  ;;  %v1719_v60 = vld [vmem:[%s2108_s16] ss:$0 sm:$0xff] }
 0x356   : > { %1359 = vmatpush.bf16.msra.mxu0 %v1688_v12 }
 0x357   : > { %v1275_v62 = vpop.f32.mrf.mxu3  ;;  %v1292_v63 = vsel %vm618_vm0, %v1289_v61, 0.0 }
 0x358   : > { %1293 = vadd.xlane.f32.xlu2 %v1292_v63  ;;  %v1720_v62 = vld [vmem:[%s2109_s17] ss:$0 sm:$0xff] }
 0x35a   : > { %1360 = vmatpush.bf16.msra.mxu0 %v1687_v13 }
 0x3cb   : > { %v1294_v7 = vpop.xlane.xlu2 %1293 }
 0x3cc   : > { %v1302_v8 = vmul.f32 %v1301_v6, %v1294_v7 }
 0x3ce   : > { %v1303_v9 = vsub.f32 %v1289_v61, %v1302_v8 }
 0x3d0   : > { %v1304_v10 = vmul.f32 %v1303_v9, %v1303_v9 }
 0x3d2   : > { %v1305_v11 = vsel %vm618_vm0, %v1304_v10, 0.0 }
 0x3d3   : > { %1306 = vadd.xlane.f32.xlu0 %v1305_v11 }
 0x446   : > { %v1307_v15 = vpop.xlane.xlu0 %1306 }
 0x447   : > { %v1308_v16 = vmul.f32 %v1307_v15, %v1301_v6 }
 0x449   : > { %v1309_v18 = vadd.f32 1e-05, %v1308_v16 }
 0x44b   : > { %1739 = vrsqrt.f32 %v1309_v18  ;;  %vm1316_vm5 = vweird.f32 %v1309_v18 }
 0x451   : > { %v1740_v19 = vpop.eup %1739 }
 0x452   : > { %v1311_v20 = vmul.f32 %v1740_v19, %v1309_v18  ;;  %vm1317_vm4 = vweird.f32 %v1740_v19 }
 0x453   : > { %vm1318_vm6 = vmor %vm1316_vm5, %vm1317_vm4 }
 0x454   : > { %v1312_v21 = vmul.f32 %v1740_v19, %v1311_v20 }
 0x456   : > { %v1313_v22 = vmul.f32 0.5, %v1312_v21 }
 0x458   : > { %v1314_v23 = vsub.f32 1.5, %v1313_v22 }
 0x45a   : > { %v1315_v24 = vmul.f32 %v1740_v19, %v1314_v23 }
 0x45c   : > { %v1319_v26 = vsel %vm1318_vm6, %v1740_v19, %v1315_v24 }
 0x45d   : > { %v1320_v28 = vmul.f32 %v1319_v26, %v1303_v9 }
 0x45f   : > { %v1324_v29 = vmul.f32 %v1715_v25, %v1320_v28 }
 0x461   : > { %v1328_v30 = vadd.f32 %v1716_v27, %v1324_v29 }
 0x463   : > { %v1329_v31 = vpack.c.bf16 %v1328_v30, %v1328_v30 }
 0x465   : > { %1643 = vmatmul.msk.bf16.vlgmr.msra.gmra.mxu0 %vm618_vm0, %v1329_v31 }
 0x4e2   : > { %v1362_v35 = vpop.f32.mrf.mxu0 }
 0x4e3   : > { %v1363_v36 = vadd.f32 %v1717_v34, %v1362_v35 }
 0x4e5   : > { %v1366_v37 = vmax.f32 %v1363_v36, 0.0 }
 0x4e7   : > { %v1367_v38 = vpack.c.bf16 %v1366_v37, %v1366_v37 }
 0x4e9   : > { %1660 = vmatmul.msk.bf16.vlgmr.msra.gmra.mxu1 %vm1404_vm7, %v1367_v38 }
 0x4ea   : > { %v1364_v39 = vpop.f32.mrf.mxu0 }
 0x566   : > { %v1417_v41 = vpop.f32.mrf.mxu1 }
 0x567   : > { %v1418_v42 = vadd.f32 %v1718_v40, %v1417_v41 }
 0x569   : > { %v1421_v43 = vadd.f32 %v1418_v42, %v1328_v30 }
 0x56b   : > { %v1424_v44 = vsel %vm618_vm0, %v1421_v43, 0.0 }
 0x56c   : > { %1425 = vadd.xlane.f32.xlu1 %v1424_v44 }
 0x56e   : > { %v1419_v45 = vpop.f32.mrf.mxu1 }
 0x5df   : > { %v1426_v46 = vpop.xlane.xlu1 %1425 }
 0x5e0   : > { %v1427_v47 = vmul.f32 %v1426_v46, %v1301_v6 }
 0x5e2   : > { %v1428_v48 = vsub.f32 %v1421_v43, %v1427_v47 }
 0x5e4   : > { %v1429_v49 = vmul.f32 %v1428_v48, %v1428_v48 }
 0x5e6   : > { %v1430_v50 = vsel %vm618_vm0, %v1429_v49, 0.0 }
 0x5e7   : > { %1431 = vadd.xlane.f32.xlu2 %v1430_v50 }
 0x65a   : > { %v1432_v51 = vpop.xlane.xlu2 %1431 }
 0x65b   : > { %v1433_v52 = vmul.f32 %v1432_v51, %v1301_v6 }
 0x65d   : > { %v1434_v53 = vadd.f32 1e-05, %v1433_v52 }
 0x65f   : > { %1741 = vrsqrt.f32 %v1434_v53  ;;  %vm1441_vm9 = vweird.f32 %v1434_v53 }
 0x665   : > { %v1742_v54 = vpop.eup %1741 }
 0x666   : > { %v1436_v55 = vmul.f32 %v1742_v54, %v1434_v53  ;;  %vm1442_vm8 = vweird.f32 %v1742_v54 }
 0x667   : > { %vm1443_vm10 = vmor %vm1441_vm9, %vm1442_vm8 }
 0x668   : > { %v1437_v56 = vmul.f32 %v1742_v54, %v1436_v55 }
 0x66a   : > { %v1438_v57 = vmul.f32 0.5, %v1437_v56 }
 0x66c   : > { %v1439_v58 = vsub.f32 1.5, %v1438_v57 }
 0x66e   : > { %v1440_v59 = vmul.f32 %v1742_v54, %v1439_v58 }
 0x670   : > { %v1444_v61 = vsel %vm1443_vm10, %v1742_v54, %v1440_v59 }
 0x671   : > { %v1445_v63 = vmul.f32 %v1444_v61, %v1428_v48 }
 0x673   : > { %v1449_v0 = vmul.f32 %v1719_v60, %v1445_v63 }
 0x675   : > { %v1453_v1 = vadd.f32 %v1720_v62, %v1449_v0 }
 0x677   : > { %1454 = vst.msk [vmem:[%s570_s23] sm:$0xff] %vm618_vm0, %v1453_v1 }
 0x678 PF: > { %s2120_s27 = sld [smem:[#allocation2_spill]] }
 0x67e   : > { %s28_s27 = sadd.s32 1, %s2120_s27  }
 0x67f   : > { %p25_p4 = scmp.ge.s32.totalorder %s28_s27, 4  }
 0x681   :  { %27 = sbr.rel (!%p25_p4) target bundleno = 4 (0x4), region = 122 }

// kernel: transformer_forward.3
= control target key start
LH: loop header
LB: loop body
LE: loop exit
PB: predicated region body
PF: predicated region fallthrough
CT: control target
= control target key end

     0   :  { %s2130_s0 = inlined_call_operand.vmem [shape: f32[2,8,32], index: 0, kind: input, shape index: {}]   ;;  %s2131_s1 = inlined_call_operand.vmem [shape: f32[8,32], index: 1, kind: input, shape index: {}]   ;;  %s2132_s2 = inlined_call_operand.vmem [shape: f32[8,8], index: 2, kind: input, shape index: {}]   ;;  %s2133_s3 = inlined_call_operand.vmem [shape: bf16[4,32,8], index: 3, kind: input, shape index: {}]   ;;  %s2134_s4 = inlined_call_operand.vmem [shape: f32[4,1,8], index: 4, kind: input, shape index: {}]   ;;  %s2135_s5 = inlined_call_operand.vmem [shape: bf16[4,32,8], index: 5, kind: input, shape index: {}]   ;;  %s2136_s6 = inlined_call_operand.vmem [shape: f32[4,1,8], index: 6, kind: input, shape index: {}]   ;;  %s2137_s7 = inlined_call_operand.vmem [shape: bf16[4,32,8], index: 7, kind: input, shape index: {}]   ;;  %s2138_s8 = inlined_call_operand.vmem [shape: f32[4,1,8], index: 8, kind: input, shape index: {}]   ;;  %s2139_s9 = inlined_call_operand.vmem [shape: bf16[4,8,32], index: 9, kind: input, shape index: {}]   ;;  %s2140_s10 = inlined_call_operand.vmem [shape: f32[1,32], index: 10, kind: input, shape index: {}]   ;;  %s2141_s11 = inlined_call_operand.vmem [shape: f32[1,32], index: 11, kind: input, shape index: {}]   ;;  %s2142_s12 = inlined_call_operand.vmem [shape: f32[1,32], index: 12, kind: input, shape index: {}]   ;;  %s2143_s13 = inlined_call_operand.vmem [shape: bf16[32,64], index: 13, kind: input, shape index: {}]   ;;  %s2144_s14 = inlined_call_operand.vmem [shape: f32[1,64], index: 14, kind: input, shape index: {}]   ;;  %s2145_s15 = inlined_call_operand.vmem [shape: bf16[64,32], index: 15, kind: input, shape index: {}]   ;;  %s2146_s16 = inlined_call_operand.vmem [shape: f32[1,32], index: 16, kind: input, shape index: {}]   ;;  %s2147_s17 = inlined_call_operand.vmem [shape: f32[1,32], index: 17, kind: input, shape index: {}]   ;;  %s2148_s18 = inlined_call_operand.vmem [shape: f32[1,32], index: 18, kind: input, shape index: {}]   ;;  %s2149_s19 = inlined_call_operand.vmem [shape: f32[2,8,32], index: 19, kind: output, shape index: {}]  }
   0x1   :  { %2153 = sst [smem:[#allocation3_spill]] %s2130_s0  ;;  %s1882_s0 = smov 0  }
   0x2   :  { %2154 = sst [smem:[#allocation4_spill]] %s2131_s1 }
   0x3   :  { %2155 = sst [smem:[#allocation5_spill]] %s2132_s2 }
   0x4   :  { %2156 = sst [smem:[#allocation6_spill]] %s2133_s3 }
   0x5   :  { %2157 = sst [smem:[#allocation7_spill]] %s2149_s19 }
   0x6 LB: > { %2158 = sst [smem:[#allocation2_spill]] %s1779_s0  ;;  %s1538_s30 = sadd.s32 4294967295, %s1779_s0   ;;  %s1779_s0 = sphi %s1882_s0, %s29_s0  }
   0x7   : > { %p1542_p0 = scmp.ge.s32.totalorder %s1779_s0, 1  ;;  %p536_p1 = scmp.lt.s32.totalorder %s1779_s0, 3 }
   0x9   : > { %p537_p2 = pnand %p1542_p0, %p536_p1 }
   0xa   : > { %s2159_s1 = sld [smem:[#allocation6_spill]] (!%p537_p2)  ;;  %p590_p3 = scmp.lt.s32.totalorder (!%p537_p2), %s1538_s30, 1 }
   0xb   : > { %540 = sbr.rel (%p537_p2) target bundleno = 1660 (0x67c), region = 96  ;;  %s2160_s3 = sld [smem:[#allocation4_spill]] (!%p537_p2) }
   0xc   : > { %s2161_s0 = sld [smem:[#allocation3_spill]] (!%p537_p2) }
   0xd   : > { %s2162_s29 = sld [smem:[#allocation5_spill]] (!%p537_p2) }
   0xe   : > { %s2163_s27 = sld [smem:[#allocation7_spill]] (!%p537_p2) }
  0x10   : > { %v1694_v0 = vld [vmem:[%s2159_s1 + $0x8] sm:$0xff]  ;;  %v1696_v1 = vld [vmem:[%s2159_s1 + $0x18] sm:$0xff]  ;;  %v1693_v4 = vld [vmem:[%s2159_s1] sm:$0xff]  ;;  %s2166_s30 = smov (!%p590_p3, %s1538_s30), 1  ;;  %vm648_vm0 = vcmask 261120   ;;  %vm1017_vm1 = vcmask 64512  }
  0x11   : > { %v1698_v2 = vld [vmem:[%s2159_s1 + $0x28] sm:$0xff]  ;;  %v1700_v3 = vld [vmem:[%s2159_s1 + $0x38] sm:$0xff]  ;;  %658 = vmatpush.bf16.msra.mxu0 %v1694_v0  ;;  %683 = vmatpush.bf16.msra.mxu1 %v1696_v1  ;;  %v1695_v5 = vld [vmem:[%s2159_s1 + $0x10] sm:$0xff]  ;;  %s1543_s23 = sshll.u32 %s2166_s30, 3  ;;  %vm1149_vm2 = vcmask 1043456   ;;  %vm1434_vm7 = vcmask 523264  }
  0x12   : > { %708 = vmatpush.bf16.msra.mxu2 %v1698_v2  ;;  %733 = vmatpush.bf16.msra.mxu3 %v1700_v3  ;;  %v1697_v6 = vld [vmem:[%s2159_s1 + $0x20] sm:$0xff]  ;;  %v1699_v7 = vld [vmem:[%s2159_s1 + $0x30] sm:$0xff]  ;;  %v1702_v9 = vld [vmem:[%s2135_s5 + $0x8] sm:$0xff]  ;;  %s593_s19 = scalar_lea.vmem %s2161_s0, %s1543_s23 }
  0x13   : > { %v601_v8 = vld [vmem:[%s2160_s3] sm:$0xff]  ;;  %v1704_v10 = vld [vmem:[%s2135_s5 + $0x18] sm:$0xff]  ;;  %v1706_v11 = vld [vmem:[%s2135_s5 + $0x28] sm:$0xff] }
  0x14   : > { %v1708_v12 = vld [vmem:[%s2135_s5 + $0x38] sm:$0xff]  ;;  %v599_v13 = vld [vmem:[%s593_s19] sm:$0xff]  ;;  %v1703_v15 = vld [vmem:[%s2135_s5 + $0x10] sm:$0xff]  ;;  %s597_s0 = scalar_lea.vmem %s2163_s27, %s1543_s23 }
  0x15   : > { %659 = vmatpush.bf16.msra.mxu0 %v1693_v4  ;;  %684 = vmatpush.bf16.msra.mxu1 %v1695_v5  ;;  %v1701_v14 = vld [vmem:[%s2135_s5] sm:$0xff]  ;;  %v600_v16 = vmul.f32 5.656854, %v599_v13  ;;  %v1707_v19 = vld [vmem:[%s2135_s5 + $0x30] sm:$0xff]  ;;  %v1714_v21 = vld [vmem:[%s2137_s7 + $0x28] sm:$0xff] }
  0x16   : > { %709 = vmatpush.bf16.msra.mxu2 %v1697_v6  ;;  %734 = vmatpush.bf16.msra.mxu3 %v1699_v7  ;;  %v1705_v18 = vld [vmem:[%s2135_s5 + $0x20] sm:$0xff]  ;;  %v1710_v22 = vld [vmem:[%s2137_s7 + $0x8] sm:$0xff]  ;;  %v1712_v23 = vld [vmem:[%s2137_s7 + $0x18] sm:$0xff] }
  0x17   : > { %v1943_v17 = vadd.f32 %v601_v8, %v600_v16  ;;  %v1713_v24 = vld [vmem:[%s2137_s7 + $0x20] sm:$0xff]  ;;  %v1711_v26 = vld [vmem:[%s2137_s7 + $0x10] sm:$0xff]  ;;  %v1716_v27 = vld [vmem:[%s2137_s7 + $0x38] sm:$0xff] }
  0x18   : > { %v1709_v25 = vld [vmem:[%s2137_s7] sm:$0xff]  ;;  %v1715_v28 = vld [vmem:[%s2137_s7 + $0x30] sm:$0xff] }
  0x19   : > { %794 = vmatpush.bf16.msrb.mxu0 %v1702_v9  ;;  %819 = vmatpush.bf16.msrb.mxu1 %v1704_v10  ;;  %v603_v20 = vpack.c.bf16 %v1943_v17, %v1943_v17  ;;  %v1733_v35 = vld [vmem:[%s2134_s4 + $0x1] ss:$0 sm:$0xff]  ;;  %v1736_v36 = vld [vmem:[%s2136_s6] ss:$0 sm:$0xff]  ;;  %v1738_v49 = vld [vmem:[%s2136_s6 + $0x2] ss:$0 sm:$0xff] }
  0x1a   : > { %844 = vmatpush.bf16.msrb.mxu2 %v1706_v11  ;;  %869 = vmatpush.bf16.msrb.mxu3 %v1708_v12  ;;  %v1737_v37 = vld [vmem:[%s2136_s6 + $0x1] ss:$0 sm:$0xff]  ;;  %v1732_v40 = vld [vmem:[%s2134_s4] ss:$0 sm:$0xff]  ;;  %v1739_v50 = vld [vmem:[%s2136_s6 + $0x3] ss:$0 sm:$0xff] }
  0x1b   : > { %1553 = vmatmul.msk.bf16.vlgmr.msra.gmra.mxu0 %vm648_vm0, %v603_v20  ;;  %1562 = vmatmul.msk.bf16.vlgmr.msra.gmra.mxu1 %vm648_vm0, %v603_v20  ;;  %v1734_v54 = vld [vmem:[%s2134_s4 + $0x2] ss:$0 sm:$0xff]  ;;  %v1735_v55 = vld [vmem:[%s2134_s4 + $0x3] ss:$0 sm:$0xff]  ;;  %v1740_v13 = vld [vmem:[%s2138_s8] ss:$0 sm:$0xff] }
  0x1c   : > { %1571 = vmatmul.msk.bf16.vlgmr.msra.gmra.mxu2 %vm648_vm0, %v603_v20  ;;  %1580 = vmatmul.msk.bf16.vlgmr.msra.gmra.mxu3 %vm648_vm0, %v603_v20 }
  0x1d   : > { %795 = vmatpush.bf16.msrb.mxu0 %v1701_v14  ;;  %820 = vmatpush.bf16.msrb.mxu1 %v1703_v15  ;;  %v1741_v14 = vld [vmem:[%s2138_s8 + $0x1] ss:$0 sm:$0xff] }
  0x1e   : > { %845 = vmatpush.bf16.msrb.mxu2 %v1705_v18  ;;  %870 = vmatpush.bf16.msrb.mxu3 %v1707_v19  ;;  %v1742_v19 = vld [vmem:[%s2138_s8 + $0x2] ss:$0 sm:$0xff] }
  0x21   : > { %926 = vmatpush.bf16.msra.mxu0 %v1710_v22  ;;  %951 = vmatpush.bf16.msra.mxu1 %v1712_v23 }
  0x22   : > { %976 = vmatpush.bf16.msra.mxu2 %v1714_v21  ;;  %1001 = vmatpush.bf16.msra.mxu3 %v1716_v27 }
  0x25   : > { %927 = vmatpush.bf16.msra.mxu0 %v1709_v25  ;;  %952 = vmatpush.bf16.msra.mxu1 %v1711_v26 }
  0x26   : > { %977 = vmatpush.bf16.msra.mxu2 %v1713_v24  ;;  %1002 = vmatpush.bf16.msra.mxu3 %v1715_v28 }
  0x2b   : > { %1589 = vmatmul.msk.bf16.vlgmr.msrb.gmra.mxu0 %vm648_vm0, %v603_v20  ;;  %1598 = vmatmul.msk.bf16.vlgmr.msrb.gmra.mxu1 %vm648_vm0, %v603_v20 }
  0x2c   : > { %1607 = vmatmul.msk.bf16.vlgmr.msrb.gmra.mxu2 %vm648_vm0, %v603_v20  ;;  %1616 = vmatmul.msk.bf16.vlgmr.msrb.gmra.mxu3 %vm648_vm0, %v603_v20 }
  0x3b   : > { %1625 = vmatmul.msk.bf16.vlgmr.msra.gmra.mxu0 %vm648_vm0, %v603_v20  ;;  %1634 = vmatmul.msk.bf16.vlgmr.msra.gmra.mxu1 %vm648_vm0, %v603_v20 }
  0x3c   : > { %1643 = vmatmul.msk.bf16.vlgmr.msra.gmra.mxu2 %vm648_vm0, %v603_v20  ;;  %1652 = vmatmul.msk.bf16.vlgmr.msra.gmra.mxu3 %vm648_vm0, %v603_v20 }
  0x98   : > { %v661_v29 = vpop.f32.mrf.mxu0  ;;  %v686_v30 = vpop.f32.mrf.mxu1 }
  0x99   : > { %v687_v43 = vadd.f32 %v1733_v35, %v686_v30  ;;  %v662_v48 = vadd.f32 %v1732_v40, %v661_v29 }
  0x9b   : > { %v741_v51 = vmul.f32 0.35355338, %v687_v43  ;;  %v740_v58 = vmul.f32 0.35355338, %v662_v48 }
  0x9d   : > { %v1009_v63 = vpack.c.bf16 %v741_v51, %v741_v51  ;;  %v1008_v4 = vpack.c.bf16 %v740_v58, %v740_v58 }
  0x9f   : > { %v711_v31 = vpop.f32.mrf.mxu2  ;;  %v736_v32 = vpop.f32.mrf.mxu3 }
  0xa0   : > { %v663_v33 = vpop.f32.mrf.mxu0  ;;  %v688_v34 = vpop.f32.mrf.mxu1  ;;  %v712_v0 = vadd.f32 %v1734_v54, %v711_v31  ;;  %v737_v1 = vadd.f32 %v1735_v55, %v736_v32  ;;  %v1743_v31 = vld [vmem:[%s2138_s8 + $0x3] ss:$0 sm:$0xff] }
  0xa2   : > { %v742_v7 = vmul.f32 0.35355338, %v712_v0  ;;  %v743_v8 = vmul.f32 0.35355338, %v737_v1 }
  0xa4   : > { %v1010_v11 = vpack.c.bf16 %v742_v7, %v742_v7  ;;  %v1011_v12 = vpack.c.bf16 %v743_v8, %v743_v8 }
  0xa7   : > { %v713_v38 = vpop.f32.mrf.mxu2  ;;  %v738_v39 = vpop.f32.mrf.mxu3 }
  0xa8   : > { %v797_v41 = vpop.f32.mrf.mxu0  ;;  %v822_v42 = vpop.f32.mrf.mxu1  ;;  %v1016_v38 = vld [vmem:[%s2162_s29] sm:$0xff] }
  0xa9   : > { %v798_v44 = vadd.f32 %v1736_v36, %v797_v41  ;;  %v823_v45 = vadd.f32 %v1737_v37, %v822_v42 }
  0xab   : > { %v1012_v46 = vpack.c.bf16 %v798_v44, %v798_v44  ;;  %v1013_v47 = vpack.c.bf16 %v823_v45, %v823_v45 }
  0xad   : > { %v1022_v52 = vsel %vm1017_vm1, %v1012_v46, 0  ;;  %v1041_v53 = vsel %vm1017_vm1, %v1013_v47, 0 }
  0xae   : > { %1031 = vmatpush.bf16.xpose.msrb.mxu0 %v1022_v52  ;;  %1050 = vmatpush.bf16.xpose.msrb.mxu1 %v1041_v53 }
  0xaf   : > { %v847_v56 = vpop.f32.mrf.mxu2  ;;  %v872_v57 = vpop.f32.mrf.mxu3 }
  0xb0   : > { %v848_v59 = vadd.f32 %v1738_v49, %v847_v56  ;;  %v873_v60 = vadd.f32 %v1739_v50, %v872_v57  ;;  %v799_v61 = vpop.f32.mrf.mxu0  ;;  %v824_v62 = vpop.f32.mrf.mxu1 }
  0xb2   : > { %v1014_v2 = vpack.c.bf16 %v848_v59, %v848_v59  ;;  %v1015_v3 = vpack.c.bf16 %v873_v60, %v873_v60 }
  0xb4   : > { %v1060_v5 = vsel %vm1017_vm1, %v1014_v2, 0  ;;  %v1079_v6 = vsel %vm1017_vm1, %v1015_v3, 0 }
  0xb5   : > { %1069 = vmatpush.bf16.xpose.msrb.mxu2 %v1060_v5  ;;  %1088 = vmatpush.bf16.xpose.msrb.mxu3 %v1079_v6 }
  0xb6   : > { %1653 = vmatmul.msk.bf16.vlgmr.msrb.gmra.mxu0 %vm1017_vm1, %v1008_v4  ;;  %1654 = vmatmul.msk.bf16.vlgmr.msrb.gmra.mxu1 %vm1017_vm1, %v1009_v63 }
  0xb7   : > { %v849_v9 = vpop.f32.mrf.mxu2  ;;  %v874_v10 = vpop.f32.mrf.mxu3 }
  0xb8   : > { %v929_v15 = vpop.f32.mrf.mxu0  ;;  %v954_v18 = vpop.f32.mrf.mxu1 }
  0xb9   : > { %v930_v16 = vadd.f32 %v1740_v13, %v929_v15  ;;  %v955_v20 = vadd.f32 %v1741_v14, %v954_v18 }
  0xbb   : > { %v1142_v21 = vpack.c.bf16 %v930_v16, %v930_v16  ;;  %v1143_v22 = vpack.c.bf16 %v955_v20, %v955_v20 }
  0xbc   : > { %1655 = vmatmul.msk.bf16.vlgmr.msrb.gmra.mxu2 %vm1017_vm1, %v1010_v11  ;;  %1656 = vmatmul.msk.bf16.vlgmr.msrb.gmra.mxu3 %vm1017_vm1, %v1011_v12 }
  0xbd   : > { %v1151_v24 = vsel %vm1149_vm2, %v1142_v21, 0  ;;  %v1170_v26 = vsel %vm1149_vm2, %v1143_v22, 0 }
  0xbe   : > { %1160 = vmatpush.bf16.msra.mxu0 %v1151_v24  ;;  %1179 = vmatpush.bf16.msra.mxu1 %v1170_v26 }
  0xbf   : > { %v979_v23 = vpop.f32.mrf.mxu2  ;;  %v1004_v32 = vpop.f32.mrf.mxu3 }
  0xc0   : > { %v980_v25 = vadd.f32 %v1742_v19, %v979_v23  ;;  %v931_v28 = vpop.f32.mrf.mxu0  ;;  %v956_v29 = vpop.f32.mrf.mxu1  ;;  %v1005_v34 = vadd.f32 %v1743_v31, %v1004_v32  ;;  %v1229_v32 = vld [vmem:[%s2139_s9 + $0x8] sm:$0xf] }
  0xc1   : > { %v1227_v28 = vld [vmem:[%s2139_s9] sm:$0xf] }
  0xc2   : > { %v1144_v27 = vpack.c.bf16 %v980_v25, %v980_v25  ;;  %v1145_v35 = vpack.c.bf16 %v1005_v34, %v1005_v34  ;;  %v1235_v29 = vsel %vm1149_vm2, %v1227_v28, 0  ;;  %v1230_v34 = vld [vmem:[%s2139_s9 + $0xc] sm:$0xf]  ;;  %v1745_v28 = vld [vmem:[%s2141_s11] ss:$0 sm:$0xff] }
  0xc3   : > { %1244 = vmatpush.bf16.msrb.mxu0 %v1235_v29 }
  0xc4   : > { %v1189_v30 = vsel %vm1149_vm2, %v1144_v27, 0  ;;  %v1208_v36 = vsel %vm1149_vm2, %v1145_v35, 0  ;;  %v1292_v35 = vsel %vm1149_vm2, %v1230_v34, 0 }
  0xc5   : > { %1198 = vmatpush.bf16.msra.mxu2 %v1189_v30  ;;  %1217 = vmatpush.bf16.msra.mxu3 %v1208_v36  ;;  %v1228_v30 = vld [vmem:[%s2139_s9 + $0x4] sm:$0xf] }
  0xc6   : > { %v1254_v31 = vsel %vm1149_vm2, %v1228_v30, 0  ;;  %v1746_v30 = vld [vmem:[%s2142_s12] ss:$0 sm:$0xff] }
  0xc7   : > { %v981_v33 = vpop.f32.mrf.mxu2  ;;  %v1006_v37 = vpop.f32.mrf.mxu3  ;;  %1263 = vmatpush.bf16.msrb.mxu1 %v1254_v31 }
  0xc8   : > { %v1273_v33 = vsel %vm1149_vm2, %v1229_v32, 0 }
  0xc9   : > { %1282 = vmatpush.bf16.msrb.mxu2 %v1273_v33  ;;  %1301 = vmatpush.bf16.msrb.mxu3 %v1292_v35  ;;  %v1720_v35 = vld [vmem:[%s2145_s15 + $0x8] sm:$0xff] }
 0x133   : > { %v1033_v39 = vpop.f32.mrf.mxu0  ;;  %v1052_v40 = vpop.f32.mrf.mxu1 }
 0x134   : > { %v1034_v41 = vadd.f32 %v1033_v39, %v1016_v38  ;;  %v1053_v43 = vadd.f32 %v1052_v40, %v1016_v38 }
 0x136   : > { %v1094_v42 = vsel %vm1017_vm1, %v1034_v41, -inf  ;;  %v1097_v46 = vsel %vm1017_vm1, %v1053_v43, -inf }
 0x137   : > { %1095 = vmax.xlane.f32.xlu1 %v1094_v42 }
 0x13b   : > { %v1035_v44 = vpop.f32.mrf.mxu0  ;;  %v1054_v45 = vpop.f32.mrf.mxu1 }
 0x13f   : > { %v1071_v47 = vpop.f32.mrf.mxu2  ;;  %v1090_v48 = vpop.f32.mrf.mxu3  ;;  %1098 = vmax.xlane.f32.xlu1 %v1097_v46 }
 0x140   : > { %v1072_v49 = vadd.f32 %v1071_v47, %v1016_v38  ;;  %v1091_v51 = vadd.f32 %v1090_v48, %v1016_v38 }
 0x142   : > { %v1100_v50 = vsel %vm1017_vm1, %v1072_v49, -inf  ;;  %v1103_v54 = vsel %vm1017_vm1, %v1091_v51, -inf }
 0x143   : > { %1101 = vmax.xlane.f32.xlu0 %v1100_v50 }
 0x147   : > { %v1073_v52 = vpop.f32.mrf.mxu2  ;;  %v1092_v53 = vpop.f32.mrf.mxu3 }
 0x14b   : > { %1104 = vmax.xlane.f32.xlu0 %v1103_v54 }
 0x1aa   : > { %v1096_v55 = vpop.xlane.xlu1 %1095 }
 0x1ab   : > { %v1106_v56 = vsub.f32 %v1034_v41, %v1096_v55 }
 0x1ad   : > { %v1110_v57 = vmul.f32 1.442695, %v1106_v56 }
 0x1af   : > { %1751 = vpow2.f32 %v1110_v57 }
 0x1b2   : > { %v1099_v58 = vpop.xlane.xlu1 %1098 }
 0x1b3   : > { %v1107_v59 = vsub.f32 %v1053_v43, %v1099_v58 }
 0x1b5   : > { %v1752_v60 = vpop.eup %1751  ;;  %v1112_v61 = vmul.f32 1.442695, %v1107_v59 }
 0x1b6   : > { %v1102_v62 = vpop.xlane.xlu0 %1101  ;;  %v1118_v63 = vsel %vm1017_vm1, %v1752_v60, 0.0 }
 0x1b7   : > { %1753 = vpow2.f32 %v1112_v61  ;;  %v1108_v0 = vsub.f32 %v1072_v49, %v1102_v62  ;;  %1119 = vadd.xlane.f32.xlu0 %v1118_v63 }
 0x1b9   : > { %v1114_v1 = vmul.f32 1.442695, %v1108_v0 }
 0x1bb   : > { %1755 = vpow2.f32 %v1114_v1 }
 0x1bd   : > { %v1754_v2 = vpop.eup %1753 }
 0x1be   : > { %v1105_v3 = vpop.xlane.xlu0 %1104  ;;  %v1121_v4 = vsel %vm1017_vm1, %v1754_v2, 0.0 }
 0x1bf   : > { %v1109_v5 = vsub.f32 %v1091_v51, %v1105_v3  ;;  %1122 = vadd.xlane.f32.xlu1 %v1121_v4  ;;  %v1781_v3 = vmov 32.0  }
 0x1c1   : > { %v1756_v6 = vpop.eup %1755  ;;  %v1116_v7 = vmul.f32 1.442695, %v1109_v5 }
 0x1c2   : > { %v1124_v8 = vsel %vm1017_vm1, %v1756_v6, 0.0 }
 0x1c3   : > { %1757 = vpow2.f32 %v1116_v7  ;;  %1125 = vadd.xlane.f32.xlu2 %v1124_v8 }
 0x1c9   : > { %v1758_v9 = vpop.eup %1757 }
 0x1ca   : > { %v1127_v10 = vsel %vm1017_vm1, %v1758_v9, 0.0 }
 0x1cb   : > { %1128 = vadd.xlane.f32.xlu2 %v1127_v10 }
 0x22a   : > { %v1120_v11 = vpop.xlane.xlu0 %1119 }
 0x22b   : > { %1759 = vrcp.f32 %v1120_v11 }
 0x231   : > { %v1760_v12 = vpop.eup %1759 }
 0x232   : > { %v1134_v13 = vmul.f32 %v1760_v12, %v1752_v60  ;;  %v1123_v14 = vpop.xlane.xlu1 %1122  ;;  %v1744_v60 = vld [vmem:[%s2140_s10] ss:$0 sm:$0xff] }
 0x233   : > { %1761 = vrcp.f32 %v1123_v14 }
 0x234   : > { %v1138_v15 = vpack.c.bf16 %v1134_v13, %v1134_v13 }
 0x236   : > { %v1126_v16 = vpop.xlane.xlu2 %1125  ;;  %1657 = vmatmul.msk.bf16.vlgmr.msra.gmra.mxu0 %vm1017_vm1, %v1138_v15  ;;  %v1717_v15 = vld [vmem:[%s2143_s13] sm:$0xff] }
 0x237   : > { %1763 = vrcp.f32 %v1126_v16  ;;  %v1722_v16 = vld [vmem:[%s2145_s15 + $0x18] sm:$0xff] }
 0x239   : > { %v1762_v18 = vpop.eup %1761 }
 0x23a   : > { %v1135_v19 = vmul.f32 %v1762_v18, %v1754_v2 }
 0x23c   : > { %v1139_v20 = vpack.c.bf16 %v1135_v19, %v1135_v19 }
 0x23d   : > { %v1764_v21 = vpop.eup %1763 }
 0x23e   : > { %v1136_v22 = vmul.f32 %v1764_v21, %v1756_v6  ;;  %v1129_v23 = vpop.xlane.xlu2 %1128  ;;  %1658 = vmatmul.msk.bf16.vlgmr.msra.gmra.mxu1 %vm1017_vm1, %v1139_v20  ;;  %v1721_v20 = vld [vmem:[%s2145_s15 + $0x10] sm:$0xff] }
 0x23f   : > { %1765 = vrcp.f32 %v1129_v23  ;;  %1442 = vmatpush.bf16.msra.mxu1 %v1722_v16 }
 0x240   : > { %v1140_v24 = vpack.c.bf16 %v1136_v22, %v1136_v22  ;;  %1767 = vrcp.f32 %v1781_v3 }
 0x242   : > { %1659 = vmatmul.msk.bf16.vlgmr.msra.gmra.mxu2 %vm1017_vm1, %v1140_v24 }
 0x243   : > { %1443 = vmatpush.bf16.msra.mxu1 %v1721_v20 }
 0x245   : > { %v1766_v25 = vpop.eup %1765 }
 0x246   : > { %v1137_v26 = vmul.f32 %v1766_v25, %v1758_v9  ;;  %v1768_v4 = vpop.eup %1767 }
 0x247   : > { %v1326_v5 = vmul.f32 32.0, %v1768_v4  ;;  %vm1330_vm3 = vweird.f32 %v1768_v4  ;;  %1444 = vmatpush.bf16.msra.mxu1 %v1720_v35 }
 0x248   : > { %v1141_v27 = vpack.c.bf16 %v1137_v26, %v1137_v26 }
 0x249   : > { %v1327_v6 = vsub.f32 1.0, %v1326_v5 }
 0x24a   : > { %1660 = vmatmul.msk.bf16.vlgmr.msra.gmra.mxu3 %vm1017_vm1, %v1141_v27 }
 0x24b   : > { %v1328_v7 = vmul.f32 %v1768_v4, %v1327_v6 }
 0x24d   : > { %v1329_v8 = vadd.f32 %v1768_v4, %v1328_v7 }
 0x24f   : > { %v1331_v9 = vsel %vm1330_vm3, %v1768_v4, %v1329_v8 }
 0x2b3   : > { %v1162_v36 = vpop.f32.mrf.mxu0 }
 0x2b4   : > { %v1223_v37 = vpack.c.bf16 %v1162_v36, %v1162_v36  ;;  %v1719_v36 = vld [vmem:[%s2145_s15] sm:$0xff] }
 0x2b5   : > { %1445 = vmatpush.bf16.msra.mxu1 %v1719_v36 }
 0x2b6   : > { %1661 = vmatmul.msk.bf16.vlgmr.msrb.gmra.mxu0 %vm1017_vm1, %v1223_v37  ;;  %v1747_v37 = vld [vmem:[%s2144_s14] ss:$0 sm:$0xff] }
 0x2bb   : > { %v1164_v38 = vpop.f32.mrf.mxu0  ;;  %v1181_v39 = vpop.f32.mrf.mxu1 }
 0x2bc   : > { %v1224_v40 = vpack.c.bf16 %v1181_v39, %v1181_v39 }
 0x2be   : > { %1662 = vmatmul.msk.bf16.vlgmr.msrb.gmra.mxu1 %vm1017_vm1, %v1224_v40 }
 0x2c3   : > { %v1183_v41 = vpop.f32.mrf.mxu1 }
 0x2c5   : > { %v1200_v42 = vpop.f32.mrf.mxu2 }
 0x2c6   : > { %v1225_v43 = vpack.c.bf16 %v1200_v42, %v1200_v42 }
 0x2c8   : > { %1663 = vmatmul.msk.bf16.vlgmr.msrb.gmra.mxu2 %vm1017_vm1, %v1225_v43  ;;  %v1748_v43 = vld [vmem:[%s2146_s16] ss:$0 sm:$0xff] }
 0x2cd   : > { %v1202_v44 = vpop.f32.mrf.mxu2  ;;  %v1219_v45 = vpop.f32.mrf.mxu3 }
 0x2ce   : > { %v1226_v46 = vpack.c.bf16 %v1219_v45, %v1219_v45 }
 0x2d0   : > { %1664 = vmatmul.msk.bf16.vlgmr.msrb.gmra.mxu3 %vm1017_vm1, %v1226_v46 }
 0x2d5   : > { %v1221_v47 = vpop.f32.mrf.mxu3 }
 0x333   : > { %v1246_v48 = vpop.f32.mrf.mxu0 }
 0x334   : > { %v1307_v54 = vsel %vm648_vm0, %v1246_v48, 0.0 }
 0x33b   : > { %v1248_v49 = vpop.f32.mrf.mxu0  ;;  %v1265_v50 = vpop.f32.mrf.mxu1 }
 0x33c   : > { %v1308_v53 = vsel %vm648_vm0, %v1265_v50, 0.0 }
 0x33d   : > { %v1309_v56 = vadd.f32 %v1308_v53, %v1307_v54 }
 0x343   : > { %v1267_v51 = vpop.f32.mrf.mxu1 }
 0x34b   : > { %v1284_v52 = vpop.f32.mrf.mxu2 }
 0x34c   : > { %v1310_v55 = vsel %vm648_vm0, %v1284_v52, 0.0 }
 0x34d   : > { %v1311_v57 = vadd.f32 %v1310_v55, %v1309_v56 }
 0x353   : > { %v1286_v58 = vpop.f32.mrf.mxu2  ;;  %v1303_v59 = vpop.f32.mrf.mxu3 }
 0x354   : > { %v1312_v61 = vsel %vm648_vm0, %v1303_v59, 0.0 }
 0x355   : > { %v1313_v62 = vadd.f32 %v1312_v61, %v1311_v57 }
 0x357   : > { %v1318_v63 = vadd.f32 %v1744_v60, %v1313_v62 }
 0x359   : > { %v1319_v0 = vadd.f32 %v1318_v63, %v1943_v17  ;;  %v1718_v17 = vld [vmem:[%s2143_s13 + $0x8] sm:$0xff]  ;;  %v1749_v63 = vld [vmem:[%s2147_s17] ss:$0 sm:$0xff] }
 0x35a   : > { %1389 = vmatpush.bf16.msra.mxu0 %v1718_v17 }
 0x35b   : > { %v1305_v1 = vpop.f32.mrf.mxu3  ;;  %v1322_v2 = vsel %vm648_vm0, %v1319_v0, 0.0 }
 0x35c   : > { %1323 = vadd.xlane.f32.xlu2 %v1322_v2  ;;  %v1750_v1 = vld [vmem:[%s2148_s18] ss:$0 sm:$0xff] }
 0x35e   : > { %1390 = vmatpush.bf16.msra.mxu0 %v1717_v15 }
 0x3cf   : > { %v1324_v10 = vpop.xlane.xlu2 %1323 }
 0x3d0   : > { %v1332_v11 = vmul.f32 %v1331_v9, %v1324_v10 }
 0x3d2   : > { %v1333_v12 = vsub.f32 %v1319_v0, %v1332_v11 }
 0x3d4   : > { %v1334_v13 = vmul.f32 %v1333_v12, %v1333_v12 }
 0x3d6   : > { %v1335_v14 = vsel %vm648_vm0, %v1334_v13, 0.0 }
 0x3d7   : > { %1336 = vadd.xlane.f32.xlu0 %v1335_v14 }
 0x44a   : > { %v1337_v18 = vpop.xlane.xlu0 %1336 }
 0x44b   : > { %v1338_v19 = vmul.f32 %v1337_v18, %v1331_v9 }
 0x44d   : > { %v1339_v21 = vadd.f32 1e-05, %v1338_v19 }
 0x44f   : > { %1769 = vrsqrt.f32 %v1339_v21  ;;  %vm1346_vm5 = vweird.f32 %v1339_v21 }
 0x455   : > { %v1770_v22 = vpop.eup %1769 }
 0x456   : > { %v1341_v23 = vmul.f32 %v1770_v22, %v1339_v21  ;;  %vm1347_vm4 = vweird.f32 %v1770_v22 }
 0x457   : > { %vm1348_vm6 = vmor %vm1346_vm5, %vm1347_vm4 }
 0x458   : > { %v1342_v24 = vmul.f32 %v1770_v22, %v1341_v23 }
 0x45a   : > { %v1343_v25 = vmul.f32 0.5, %v1342_v24 }
 0x45c   : > { %v1344_v26 = vsub.f32 1.5, %v1343_v25 }
 0x45e   : > { %v1345_v27 = vmul.f32 %v1770_v22, %v1344_v26 }
 0x460   : > { %v1349_v29 = vsel %vm1348_vm6, %v1770_v22, %v1345_v27 }
 0x461   : > { %v1350_v31 = vmul.f32 %v1349_v29, %v1333_v12 }
 0x463   : > { %v1354_v32 = vmul.f32 %v1745_v28, %v1350_v31 }
 0x465   : > { %v1358_v33 = vadd.f32 %v1746_v30, %v1354_v32 }
 0x467   : > { %v1359_v34 = vpack.c.bf16 %v1358_v33, %v1358_v33 }
 0x469   : > { %1673 = vmatmul.msk.bf16.vlgmr.msra.gmra.mxu0 %vm648_vm0, %v1359_v34 }
 0x4e6   : > { %v1392_v38 = vpop.f32.mrf.mxu0 }
 0x4e7   : > { %v1393_v39 = vadd.f32 %v1747_v37, %v1392_v38 }
 0x4e9   : > { %v1396_v40 = vmax.f32 %v1393_v39, 0.0 }
 0x4eb   : > { %v1397_v41 = vpack.c.bf16 %v1396_v40, %v1396_v40 }
 0x4ed   : > { %1690 = vmatmul.msk.bf16.vlgmr.msra.gmra.mxu1 %vm1434_vm7, %v1397_v41 }
 0x4ee   : > { %v1394_v42 = vpop.f32.mrf.mxu0 }
 0x56a   : > { %v1447_v44 = vpop.f32.mrf.mxu1 }
 0x56b   : > { %v1448_v45 = vadd.f32 %v1748_v43, %v1447_v44 }
 0x56d   : > { %v1451_v46 = vadd.f32 %v1448_v45, %v1358_v33 }
 0x56f   : > { %v1454_v47 = vsel %vm648_vm0, %v1451_v46, 0.0 }
 0x570   : > { %1455 = vadd.xlane.f32.xlu1 %v1454_v47 }
 0x572   : > { %v1449_v48 = vpop.f32.mrf.mxu1 }
 0x5e3   : > { %v1456_v49 = vpop.xlane.xlu1 %1455 }
 0x5e4   : > { %v1457_v50 = vmul.f32 %v1456_v49, %v1331_v9 }
 0x5e6   : > { %v1458_v51 = vsub.f32 %v1451_v46, %v1457_v50 }
 0x5e8   : > { %v1459_v52 = vmul.f32 %v1458_v51, %v1458_v51 }
 0x5ea   : > { %v1460_v53 = vsel %vm648_vm0, %v1459_v52, 0.0 }
 0x5eb   : > { %1461 = vadd.xlane.f32.xlu2 %v1460_v53 }
 0x65e   : > { %v1462_v54 = vpop.xlane.xlu2 %1461 }
 0x65f   : > { %v1463_v55 = vmul.f32 %v1462_v54, %v1331_v9 }
 0x661   : > { %v1464_v56 = vadd.f32 1e-05, %v1463_v55 }
 0x663   : > { %1771 = vrsqrt.f32 %v1464_v56  ;;  %vm1471_vm9 = vweird.f32 %v1464_v56 }
 0x669   : > { %v1772_v57 = vpop.eup %1771 }
 0x66a   : > { %v1466_v58 = vmul.f32 %v1772_v57, %v1464_v56  ;;  %vm1472_vm8 = vweird.f32 %v1772_v57 }
 0x66b   : > { %vm1473_vm10 = vmor %vm1471_vm9, %vm1472_vm8 }
 0x66c   : > { %v1467_v59 = vmul.f32 %v1772_v57, %v1466_v58 }
 0x66e   : > { %v1468_v60 = vmul.f32 0.5, %v1467_v59 }
 0x670   : > { %v1469_v61 = vsub.f32 1.5, %v1468_v60 }
 0x672   : > { %v1470_v62 = vmul.f32 %v1772_v57, %v1469_v61 }
 0x674   : > { %v1474_v0 = vsel %vm1473_vm10, %v1772_v57, %v1470_v62 }
 0x675   : > { %v1475_v2 = vmul.f32 %v1474_v0, %v1458_v51 }
 0x677   : > { %v1479_v3 = vmul.f32 %v1749_v63, %v1475_v2 }
 0x679   : > { %v1483_v4 = vadd.f32 %v1750_v1, %v1479_v3 }
 0x67b   : > { %1484 = vst.msk [vmem:[%s597_s0] sm:$0xff] %vm648_vm0, %v1483_v4 }
 0x67c PF: > { %s2164_s19 = sld [smem:[#allocation2_spill]] }
 0x682   : > { %s29_s0 = sadd.s32 1, %s2164_s19  }
 0x683   : > { %p26_p4 = scmp.ge.s32.totalorder %s29_s0, 4  }
 0x685   :  { %28 = sbr.rel (!%p26_p4) target bundleno = 6 (0x6), region = 126 }

</bundles_post_ra>
